<compile_context>
chip_gen: v5e
topology: v5e:2x2
jax: 0.10.0
libtpu: 0.0.40
codegen_flags: <defaults>
</compile_context>

<pallas_src>
import functools
import math

import jax
import jax.numpy as jnp
from jax import lax
from jax.experimental import pallas as pl
from jax.experimental.pallas import tpu as pltpu

EPS = 0.1        # regularization coefficient (module default)
MAX_ITER = 50    # maximum Sinkhorn iterations (module default)
P_EXP = 1        # distance exponent p (module default)
THRESH = 0.1     # convergence threshold from the reference implementation

_LANE = 128
_SUBLANE = 8


def _round_up(v, m):
    return (v + m - 1) // m * m


def _device_kind():
    try:
        return jax.devices()[0].device_kind.lower()
    except Exception:
        return ""


def _supports_bf16_eup():
    """v6e / v7x have a bf16-capable EUP; v5e and older do not."""
    kind = _device_kind()
    return any(tag in kind for tag in ("v6", "v7", "tpu7"))


def _vmem_capacity_bytes():
    try:
        return int(pltpu.get_tpu_info().vmem_capacity_bytes)
    except Exception:
        kind = _device_kind()
        if "v7" in kind or "tpu7" in kind:
            return 64 << 20
        return 128 << 20


def _sinkhorn_kernel(x_ref, yt_ref, dist_ref, pi_ref, c_ref, negc_ref, *,
                     p1, p2, p1_pad, p2_pad, d_pad, use_bf16_exp):
    """One batch element per grid step.

    x_ref   : (1, p1_pad, d_pad)  x points (P1 on sublanes, D on lanes), f32
    yt_ref  : (1, d_pad, p2_pad)  y^T (P2 lane-dense), f32
    dist_ref: (1, 1, 1)
    pi_ref  : (1, p1, p2)         UNPADDED transport plan output
    c_ref   : (1, p1, p2)         UNPADDED cost matrix output
    negc_ref: (p1_pad, p2_pad)    VMEM scratch holding -C/eps (padded, finite)
    """
    f32 = jnp.float32

    # ---- cost matrix C[i, j] = sum_d |x[i,d] - y[j,d]|**p -------------------
    # Padded rows/cols of x and y are zero, so padded C entries are finite.
    if P_EXP == 2:
        # MXU decomposition: ||x||^2 + ||y||^2 - 2 x.y^T (bf16 MXU, f32 acc).
        xv = x_ref[0]                                     # (p1_pad, d_pad)
        ytv = yt_ref[0]                                   # (d_pad, p2_pad)
        x2 = jnp.sum(xv * xv, axis=1, keepdims=True)      # (p1_pad, 1)
        y2 = jnp.sum(ytv * ytv, axis=0, keepdims=True)    # (1, p2_pad)
        dotxy = jnp.dot(xv.astype(jnp.bfloat16), ytv.astype(jnp.bfloat16),
                        preferred_element_type=f32)
        cmat = jnp.maximum(x2 + y2 - 2.0 * dotxy, f32(0.0))   # cancellation guard
        negc_ref[...] = cmat * f32(-1.0 / EPS)
        c_ref[0] = cmat[:p1, :p2]
    else:
        # P1-strip accumulation: keep the accumulator small enough to stay in
        # vregs (<= ~16 vregs), store each strip once.
        strip = max(_SUBLANE,
                    min(p1_pad, (16384 // p2_pad) // _SUBLANE * _SUBLANE))
        for s0 in range(0, p1_pad, strip):
            rows = min(strip, p1_pad - s0)
            acc = jnp.zeros((rows, p2_pad), f32)
            for d in range(d_pad):                            # static, unrolled
                xc = x_ref[0, s0:s0 + rows, d:d + 1]          # (rows, 1)
                yr = yt_ref[0, d:d + 1, :]                    # (1, p2_pad)
                diff = jnp.abs(xc - yr)
                if P_EXP == 1:
                    acc = acc + diff
                elif float(P_EXP) == int(P_EXP):
                    term = diff
                    for _ in range(int(P_EXP) - 1):           # small integer p
                        term = term * diff
                    acc = acc + term
                else:
                    acc = acc + diff ** f32(P_EXP)            # TODO(synk): EUP-heavy
            negc_ref[s0:s0 + rows, :] = acc * f32(-1.0 / EPS)  # hoisted /eps
            if s0 < p1:                                        # valid C sub-block
                vr = min(rows, p1 - s0)
                c_ref[0, s0:s0 + vr, :] = acc[:vr, :p2]

    # ---- masks for padded rows / columns ------------------------------------
    row_ids = lax.broadcasted_iota(jnp.int32, (p1_pad, 1), 0)
    col_ids = lax.broadcasted_iota(jnp.int32, (1, p2_pad), 1)
    row_valid = row_ids < p1
    col_valid = col_ids < p2
    neg_big = f32(-1e30)
    row_neg = jnp.where(row_valid, f32(0.0), neg_big)    # (p1_pad, 1)
    col_neg = jnp.where(col_valid, f32(0.0), neg_big)    # (1, p2_pad)
    row_maskf = row_valid.astype(f32)

    log_mu = f32(math.log(1.0 / p1 + 1e-8))
    log_nu = f32(math.log(1.0 / p2 + 1e-8))

    def lse(m, axis):
        mx = jnp.max(m, axis=axis, keepdims=True)
        sh = m - mx
        if use_bf16_exp:
            # v6e/v7x: bf16 EUP ~2x exp throughput; sum accumulated in f32.
            e = jnp.exp(sh.astype(jnp.bfloat16)).astype(f32)
        else:
            e = jnp.exp(sh)
        return mx + jnp.log(jnp.sum(e, axis=axis, keepdims=True))

    # Carry u/eps and v/eps; M = -C/eps + u/eps + v/eps.  P2 stays on lanes for
    # both reductions (axis=1 lane reduce, axis=0 sublane reduce): no transpose.
    # Mask adds are folded into the small u/v vectors -> 4 full-matrix adds/iter.
    def cond(carry):
        it, _, _, err = carry
        return jnp.logical_and(it < MAX_ITER, err >= THRESH)

    def body(carry):
        it, u_eps, v_eps, _ = carry
        negc = negc_ref[...]
        m1 = negc + u_eps + (v_eps + col_neg)                    # mask padded cols
        u_new = (log_mu - lse(m1, axis=1)) + u_eps               # (p1_pad, 1)
        m2 = negc + (u_new + row_neg) + v_eps                    # mask padded rows
        v_new = (log_nu - lse(m2, axis=0)) + v_eps               # (1, p2_pad)
        err = f32(EPS) * jnp.sum(jnp.abs(u_new - u_eps) * row_maskf)
        return it + 1, u_new, v_new, err

    carry0 = (jnp.int32(0),
              jnp.zeros((p1_pad, 1), f32),
              jnp.zeros((1, p2_pad), f32),
              f32(1e30))
    _, u_eps, v_eps, _ = lax.while_loop(cond, body, carry0)

    # ---- transport plan, cost, distance --------------------------------------
    negc = negc_ref[...]
    m_fin = negc + u_eps + v_eps
    mask2 = jnp.where(jnp.logical_and(row_valid, col_valid), f32(1.0), f32(0.0))
    pi = jnp.exp(m_fin) * mask2                       # padded entries -> 0
    pi_ref[0] = pi[:p1, :p2]
    # cost = sum(pi * C) = -eps * sum(pi * (-C/eps)); padded pi entries are 0.
    cost = f32(-EPS) * jnp.sum(pi * negc, axis=(0, 1), keepdims=True)  # (1, 1)
    if P_EXP == 1:
        dist = cost                                   # cost ** 1 == identity
    elif P_EXP == 2:
        dist = jnp.sqrt(jnp.maximum(cost, f32(0.0)))
    else:
        dist = jnp.maximum(cost, f32(1e-30)) ** f32(1.0 / P_EXP)
    dist_ref[0] = dist


@functools.partial(jax.jit, static_argnames=("use_bf16_exp",))
def _sinkhorn_pallas(x, y, use_bf16_exp=False):
    n, p1, d = x.shape
    p2 = y.shape[1]

    p1_pad = _round_up(p1, _SUBLANE)
    p2_pad = _round_up(p2, _LANE)        # lane-dense last dim for -C/eps / M / v
    d_pad = _round_up(d, _SUBLANE)

    x_p = jnp.pad(x.astype(jnp.float32),
                  ((0, 0), (0, p1_pad - p1), (0, d_pad - d)))
    y_p = jnp.pad(y.astype(jnp.float32),
                  ((0, 0), (0, p2_pad - p2), (0, d_pad - d)))
    y_t = jnp.transpose(y_p, (0, 2, 1))  # (n, d_pad, p2_pad)

    kernel = functools.partial(_sinkhorn_kernel, p1=p1, p2=p2,
                               p1_pad=p1_pad, p2_pad=p2_pad, d_pad=d_pad,
                               use_bf16_exp=use_bf16_exp)

    # pi / C emitted UNPADDED: no wrapper-side slicing pass over HBM.
    out_shape = (
        jax.ShapeDtypeStruct((n, 1, 1), jnp.float32),    # dist
        jax.ShapeDtypeStruct((n, p1, p2), jnp.float32),  # pi
        jax.ShapeDtypeStruct((n, p1, p2), jnp.float32),  # C
    )

    grid_spec = pltpu.PrefetchScalarGridSpec(
        num_scalar_prefetch=0,
        grid=(n,),
        in_specs=[
            pl.BlockSpec((1, p1_pad, d_pad), lambda b: (b, 0, 0)),
            pl.BlockSpec((1, d_pad, p2_pad), lambda b: (b, 0, 0)),
        ],
        out_specs=(
            pl.BlockSpec((1, 1, 1), lambda b: (b, 0, 0)),
            pl.BlockSpec((1, p1, p2), lambda b: (b, 0, 0)),   # full-extent dims
            pl.BlockSpec((1, p1, p2), lambda b: (b, 0, 0)),
        ),
        scratch_shapes=[pltpu.VMEM((p1_pad, p2_pad), jnp.float32)],
    )

    # ---- generation-aware VMEM budget ----------------------------------------
    mat = 4 * p1_pad * p2_pad
    needed = (2 * 4 * (p1_pad * d_pad + d_pad * p2_pad)   # double-buffered inputs
              + 2 * 4 * (2 * p1 * p2 + 1)                 # double-buffered outputs
              + mat                                       # -C/eps scratch
              + 3 * mat                                   # live temporaries headroom
              + (4 << 20))                                # misc headroom
    vmem_cap = _vmem_capacity_bytes()
    if vmem_cap <= (64 << 20):                # v7x-class: leave real headroom
        cap = min(vmem_cap - (12 << 20), 52 << 20)
    else:                                     # v5e / v6e: 128 MiB physical
        cap = min(vmem_cap - (16 << 20), 110 << 20)
    cap = max(cap, 32 << 20)
    vmem_limit = int(min(max(needed, 32 << 20), cap))

    flops = n * (3 * p1_pad * p2_pad * d_pad
                 + 10 * p1_pad * p2_pad * MAX_ITER
                 + 6 * p1_pad * p2_pad)
    transcend = n * p1_pad * p2_pad * (2 * MAX_ITER + 1)
    bytes_acc = 4 * (x_p.size + y_t.size + n * (2 * p1 * p2 + 1))

    dist3, pi, cmat = pl.pallas_call(
        kernel,
        out_shape=out_shape,
        grid_spec=grid_spec,
        compiler_params=pltpu.CompilerParams(
            dimension_semantics=("parallel",),   # batch over cores; keep N >= 2 on v7x
            vmem_limit_bytes=vmem_limit),
        cost_estimate=pl.CostEstimate(flops=int(flops),
                                      transcendentals=int(transcend),
                                      bytes_accessed=int(bytes_acc)),
    )(x_p, y_t)

    # Fourth return is None when track_error=False, matching the module.
    return dist3[:, 0, 0], pi, cmat, None


def sinkhorn_distance(x, y, use_bf16_exp=None):
    """Pallas-backed SinkhornDistance(eps=0.1, max_iter=50, p=1)(x, y) forward.

    use_bf16_exp: opt-in bf16 exp inside logsumexp on v6e/v7x (~2x on the
    EUP-bound Sinkhorn loop).  Default False: the error compounds over up to
    50 iterations and must be validated against the caller's tolerance.
    """
    if use_bf16_exp is None:
        use_bf16_exp = False
    if use_bf16_exp and not _supports_bf16_eup():
        use_bf16_exp = False                    # v5e and older: f32 EUP only
    return _sinkhorn_pallas(x, y, use_bf16_exp=bool(use_bf16_exp))


def _sinkhorn_reference(x, y):
    """Pure-JAX reference: same math, same per-batch-element stopping rule."""
    n, p1, _ = x.shape
    p2 = y.shape[1]
    x = x.astype(jnp.float32)
    y = y.astype(jnp.float32)
    diff = jnp.abs(x[:, :, None, :] - y[:, None, :, :])
    if P_EXP == 1:
        cmat = jnp.sum(diff, axis=-1)
    else:
        cmat = jnp.sum(diff ** P_EXP, axis=-1)
    log_mu = jnp.log(1.0 / p1 + 1e-8)
    log_nu = jnp.log(1.0 / p2 + 1e-8)

    def M(u, v):
        return (-cmat + u[:, :, None] + v[:, None, :]) / EPS

    def lse(m, axis):
        mx = jnp.max(m, axis=axis, keepdims=True)
        return jnp.squeeze(mx + jnp.log(jnp.sum(jnp.exp(m - mx), axis=axis,
                                                keepdims=True)), axis=axis)

    def body(_, carry):
        u, v, done = carry
        u1 = u
        u_new = EPS * (log_mu - lse(M(u, v), -1)) + u
        v_new = EPS * (log_nu - lse(M(u_new, v), -2)) + v
        err = jnp.sum(jnp.abs(u_new - u1), axis=-1)      # per batch element
        u = jnp.where(done[:, None], u, u_new)
        v = jnp.where(done[:, None], v, v_new)
        done = jnp.logical_or(done, err < THRESH)
        return u, v, done

    u0 = jnp.zeros((n, p1), jnp.float32)
    v0 = jnp.zeros((n, p2), jnp.float32)
    done0 = jnp.zeros((n,), bool)
    u, v, _ = lax.fori_loop(0, MAX_ITER, body, (u0, v0, done0))
    pi = jnp.exp(M(u, v))
    cost = jnp.sum(pi * cmat, axis=(-2, -1))
    dist = cost if P_EXP == 1 else cost ** (1.0 / P_EXP)
    return dist, pi, cmat


if __name__ == "__main__":
    key = jax.random.PRNGKey(0)
    kx, ky = jax.random.split(key)
    N, P1, P2, D = 2, 8, 8, 32
    x = jax.random.normal(kx, (N, P1, D), dtype=jnp.float32)
    y = jax.random.normal(ky, (N, P2, D), dtype=jnp.float32)

    # ---- strict check: default (f32-exp) path ------------------------------
    dist, pi, cmat, err = sinkhorn_distance(x, y)
    jax.block_until_ready((dist, pi, cmat))

    dist_r, pi_r, c_r = _sinkhorn_reference(x, y)

    assert dist.shape == (N,) and pi.shape == (N, P1, P2) and cmat.shape == (N, P1, P2)
    assert bool(jnp.all(jnp.isfinite(dist)))
    assert bool(jnp.all(jnp.isfinite(pi)))
    assert bool(jnp.all(jnp.isfinite(cmat)))
    assert jnp.allclose(cmat, c_r, rtol=2e-3, atol=2e-3)
    assert jnp.allclose(pi, pi_r, rtol=2e-3, atol=2e-3)
    assert jnp.allclose(dist, dist_r, rtol=2e-3, atol=2e-3)
    assert err is None

    # ---- opt-in fast path: bf16 exp on v6e/v7x (sanity only) ---------------
    # TODO(synk): validate the bf16-exp tolerance for production data before
    #             enabling it by default (error compounds over <=50 iterations).
    if _supports_bf16_eup():
        dist_b, pi_b, c_b, _ = sinkhorn_distance(x, y, use_bf16_exp=True)
        jax.block_until_ready((dist_b, pi_b, c_b))
        assert dist_b.shape == (N,) and pi_b.shape == (N, P1, P2)
        assert bool(jnp.all(jnp.isfinite(dist_b)))
        assert bool(jnp.all(jnp.isfinite(pi_b)))
        assert jnp.allclose(c_b, c_r, rtol=2e-3, atol=2e-3)   # cost build stays f32

    print("KERNEL_OK")
</pallas_src>

<mosaic_0001>
module attributes {stable_mosaic.version = 11 : i64} {
  func.func @_sinkhorn_kernel(%arg0: i32, %arg1: memref<1x8x32xf32, #tpu.memory_space<vmem>>, %arg2: memref<1x32x128xf32, #tpu.memory_space<vmem>>, %arg3: memref<1x1x1xf32, #tpu.memory_space<vmem>>, %arg4: memref<1x8x8xf32, #tpu.memory_space<vmem>>, %arg5: memref<1x8x8xf32, #tpu.memory_space<vmem>>, %arg6: memref<8x128xf32, #tpu.memory_space<vmem>>) attributes {dimension_semantics = [#tpu.dimension_semantics<parallel>], iteration_bounds = array<i64: 2>, scalar_prefetch = 0 : i64, scratch_operands = 1 : i64, tpu.core_type = #tpu.core_type<tc>, window_params = [{transform_indices = @transform_0, window_bounds = array<i64: 1, 8, 32>}, {transform_indices = @transform_1, window_bounds = array<i64: 1, 32, 128>}, {transform_indices = @transform_2, window_bounds = array<i64: 1, 1, 1>}, {transform_indices = @transform_3, window_bounds = array<i64: 1, 8, 8>}, {transform_indices = @transform_4, window_bounds = array<i64: 1, 8, 8>}]} {
    %cst = arith.constant 0.000000e+00 : f32
    %0 = vector.broadcast %cst : f32 to vector<8x128xf32>
    %c0 = arith.constant 0 : index
    %c0_0 = arith.constant 0 : index
    %c0_1 = arith.constant 0 : index
    %1 = vector.load %arg1[%c0, %c0_0, %c0_1] : memref<1x8x32xf32, #tpu.memory_space<vmem>>, vector<1x8x1xf32>
    %2 = vector.shape_cast %1 : vector<1x8x1xf32> to vector<8x1xf32>
    %c0_2 = arith.constant 0 : index
    %c0_3 = arith.constant 0 : index
    %c0_4 = arith.constant 0 : index
    %3 = vector.load %arg2[%c0_2, %c0_3, %c0_4] : memref<1x32x128xf32, #tpu.memory_space<vmem>>, vector<1x1x128xf32>
    %4 = vector.shape_cast %3 : vector<1x1x128xf32> to vector<1x128xf32>
    %5 = vector.broadcast %2 : vector<8x1xf32> to vector<8x128xf32>
    %6 = vector.broadcast %4 : vector<1x128xf32> to vector<8x128xf32>
    %7 = arith.subf %5, %6 : vector<8x128xf32>
    %8 = math.absf %7 : vector<8x128xf32>
    %9 = arith.addf %0, %8 : vector<8x128xf32>
    %c0_5 = arith.constant 0 : index
    %c0_6 = arith.constant 0 : index
    %c1 = arith.constant 1 : index
    %10 = vector.load %arg1[%c0_5, %c0_6, %c1] : memref<1x8x32xf32, #tpu.memory_space<vmem>>, vector<1x8x1xf32>
    %11 = vector.shape_cast %10 : vector<1x8x1xf32> to vector<8x1xf32>
    %c0_7 = arith.constant 0 : index
    %c1_8 = arith.constant 1 : index
    %c0_9 = arith.constant 0 : index
    %12 = vector.load %arg2[%c0_7, %c1_8, %c0_9] : memref<1x32x128xf32, #tpu.memory_space<vmem>>, vector<1x1x128xf32>
    %13 = vector.shape_cast %12 : vector<1x1x128xf32> to vector<1x128xf32>
    %14 = vector.broadcast %11 : vector<8x1xf32> to vector<8x128xf32>
    %15 = vector.broadcast %13 : vector<1x128xf32> to vector<8x128xf32>
    %16 = arith.subf %14, %15 : vector<8x128xf32>
    %17 = math.absf %16 : vector<8x128xf32>
    %18 = arith.addf %9, %17 : vector<8x128xf32>
    %c0_10 = arith.constant 0 : index
    %c0_11 = arith.constant 0 : index
    %c2 = arith.constant 2 : index
    %19 = vector.load %arg1[%c0_10, %c0_11, %c2] : memref<1x8x32xf32, #tpu.memory_space<vmem>>, vector<1x8x1xf32>
    %20 = vector.shape_cast %19 : vector<1x8x1xf32> to vector<8x1xf32>
    %c0_12 = arith.constant 0 : index
    %c2_13 = arith.constant 2 : index
    %c0_14 = arith.constant 0 : index
    %21 = vector.load %arg2[%c0_12, %c2_13, %c0_14] : memref<1x32x128xf32, #tpu.memory_space<vmem>>, vector<1x1x128xf32>
    %22 = vector.shape_cast %21 : vector<1x1x128xf32> to vector<1x128xf32>
    %23 = vector.broadcast %20 : vector<8x1xf32> to vector<8x128xf32>
    %24 = vector.broadcast %22 : vector<1x128xf32> to vector<8x128xf32>
    %25 = arith.subf %23, %24 : vector<8x128xf32>
    %26 = math.absf %25 : vector<8x128xf32>
    %27 = arith.addf %18, %26 : vector<8x128xf32>
    %c0_15 = arith.constant 0 : index
    %c0_16 = arith.constant 0 : index
    %c3 = arith.constant 3 : index
    %28 = vector.load %arg1[%c0_15, %c0_16, %c3] : memref<1x8x32xf32, #tpu.memory_space<vmem>>, vector<1x8x1xf32>
    %29 = vector.shape_cast %28 : vector<1x8x1xf32> to vector<8x1xf32>
    %c0_17 = arith.constant 0 : index
    %c3_18 = arith.constant 3 : index
    %c0_19 = arith.constant 0 : index
    %30 = vector.load %arg2[%c0_17, %c3_18, %c0_19] : memref<1x32x128xf32, #tpu.memory_space<vmem>>, vector<1x1x128xf32>
    %31 = vector.shape_cast %30 : vector<1x1x128xf32> to vector<1x128xf32>
    %32 = vector.broadcast %29 : vector<8x1xf32> to vector<8x128xf32>
    %33 = vector.broadcast %31 : vector<1x128xf32> to vector<8x128xf32>
    %34 = arith.subf %32, %33 : vector<8x128xf32>
    %35 = math.absf %34 : vector<8x128xf32>
    %36 = arith.addf %27, %35 : vector<8x128xf32>
    %c0_20 = arith.constant 0 : index
    %c0_21 = arith.constant 0 : index
    %c4 = arith.constant 4 : index
    %37 = vector.load %arg1[%c0_20, %c0_21, %c4] : memref<1x8x32xf32, #tpu.memory_space<vmem>>, vector<1x8x1xf32>
    %38 = vector.shape_cast %37 : vector<1x8x1xf32> to vector<8x1xf32>
    %c0_22 = arith.constant 0 : index
    %c4_23 = arith.constant 4 : index
    %c0_24 = arith.constant 0 : index
    %39 = vector.load %arg2[%c0_22, %c4_23, %c0_24] : memref<1x32x128xf32, #tpu.memory_space<vmem>>, vector<1x1x128xf32>
    %40 = vector.shape_cast %39 : vector<1x1x128xf32> to vector<1x128xf32>
    %41 = vector.broadcast %38 : vector<8x1xf32> to vector<8x128xf32>
    %42 = vector.broadcast %40 : vector<1x128xf32> to vector<8x128xf32>
    %43 = arith.subf %41, %42 : vector<8x128xf32>
    %44 = math.absf %43 : vector<8x128xf32>
    %45 = arith.addf %36, %44 : vector<8x128xf32>
    %c0_25 = arith.constant 0 : index
    %c0_26 = arith.constant 0 : index
    %c5 = arith.constant 5 : index
    %46 = vector.load %arg1[%c0_25, %c0_26, %c5] : memref<1x8x32xf32, #tpu.memory_space<vmem>>, vector<1x8x1xf32>
    %47 = vector.shape_cast %46 : vector<1x8x1xf32> to vector<8x1xf32>
    %c0_27 = arith.constant 0 : index
    %c5_28 = arith.constant 5 : index
    %c0_29 = arith.constant 0 : index
    %48 = vector.load %arg2[%c0_27, %c5_28, %c0_29] : memref<1x32x128xf32, #tpu.memory_space<vmem>>, vector<1x1x128xf32>
    %49 = vector.shape_cast %48 : vector<1x1x128xf32> to vector<1x128xf32>
    %50 = vector.broadcast %47 : vector<8x1xf32> to vector<8x128xf32>
    %51 = vector.broadcast %49 : vector<1x128xf32> to vector<8x128xf32>
    %52 = arith.subf %50, %51 : vector<8x128xf32>
    %53 = math.absf %52 : vector<8x128xf32>
    %54 = arith.addf %45, %53 : vector<8x128xf32>
    %c0_30 = arith.constant 0 : index
    %c0_31 = arith.constant 0 : index
    %c6 = arith.constant 6 : index
    %55 = vector.load %arg1[%c0_30, %c0_31, %c6] : memref<1x8x32xf32, #tpu.memory_space<vmem>>, vector<1x8x1xf32>
    %56 = vector.shape_cast %55 : vector<1x8x1xf32> to vector<8x1xf32>
    %c0_32 = arith.constant 0 : index
    %c6_33 = arith.constant 6 : index
    %c0_34 = arith.constant 0 : index
    %57 = vector.load %arg2[%c0_32, %c6_33, %c0_34] : memref<1x32x128xf32, #tpu.memory_space<vmem>>, vector<1x1x128xf32>
    %58 = vector.shape_cast %57 : vector<1x1x128xf32> to vector<1x128xf32>
    %59 = vector.broadcast %56 : vector<8x1xf32> to vector<8x128xf32>
    %60 = vector.broadcast %58 : vector<1x128xf32> to vector<8x128xf32>
    %61 = arith.subf %59, %60 : vector<8x128xf32>
    %62 = math.absf %61 : vector<8x128xf32>
    %63 = arith.addf %54, %62 : vector<8x128xf32>
    %c0_35 = arith.constant 0 : index
    %c0_36 = arith.constant 0 : index
    %c7 = arith.constant 7 : index
    %64 = vector.load %arg1[%c0_35, %c0_36, %c7] : memref<1x8x32xf32, #tpu.memory_space<vmem>>, vector<1x8x1xf32>
    %65 = vector.shape_cast %64 : vector<1x8x1xf32> to vector<8x1xf32>
    %c0_37 = arith.constant 0 : index
    %c7_38 = arith.constant 7 : index
    %c0_39 = arith.constant 0 : index
    %66 = vector.load %arg2[%c0_37, %c7_38, %c0_39] : memref<1x32x128xf32, #tpu.memory_space<vmem>>, vector<1x1x128xf32>
    %67 = vector.shape_cast %66 : vector<1x1x128xf32> to vector<1x128xf32>
    %68 = vector.broadcast %65 : vector<8x1xf32> to vector<8x128xf32>
    %69 = vector.broadcast %67 : vector<1x128xf32> to vector<8x128xf32>
    %70 = arith.subf %68, %69 : vector<8x128xf32>
    %71 = math.absf %70 : vector<8x128xf32>
    %72 = arith.addf %63, %71 : vector<8x128xf32>
    %c0_40 = arith.constant 0 : index
    %c0_41 = arith.constant 0 : index
    %c8 = arith.constant 8 : index
    %73 = vector.load %arg1[%c0_40, %c0_41, %c8] : memref<1x8x32xf32, #tpu.memory_space<vmem>>, vector<1x8x1xf32>
    %74 = vector.shape_cast %73 : vector<1x8x1xf32> to vector<8x1xf32>
    %c0_42 = arith.constant 0 : index
    %c8_43 = arith.constant 8 : index
    %c0_44 = arith.constant 0 : index
    %75 = vector.load %arg2[%c0_42, %c8_43, %c0_44] : memref<1x32x128xf32, #tpu.memory_space<vmem>>, vector<1x1x128xf32>
    %76 = vector.shape_cast %75 : vector<1x1x128xf32> to vector<1x128xf32>
    %77 = vector.broadcast %74 : vector<8x1xf32> to vector<8x128xf32>
    %78 = vector.broadcast %76 : vector<1x128xf32> to vector<8x128xf32>
    %79 = arith.subf %77, %78 : vector<8x128xf32>
    %80 = math.absf %79 : vector<8x128xf32>
    %81 = arith.addf %72, %80 : vector<8x128xf32>
    %c0_45 = arith.constant 0 : index
    %c0_46 = arith.constant 0 : index
    %c9 = arith.constant 9 : index
    %82 = vector.load %arg1[%c0_45, %c0_46, %c9] : memref<1x8x32xf32, #tpu.memory_space<vmem>>, vector<1x8x1xf32>
    %83 = vector.shape_cast %82 : vector<1x8x1xf32> to vector<8x1xf32>
    %c0_47 = arith.constant 0 : index
    %c9_48 = arith.constant 9 : index
    %c0_49 = arith.constant 0 : index
    %84 = vector.load %arg2[%c0_47, %c9_48, %c0_49] : memref<1x32x128xf32, #tpu.memory_space<vmem>>, vector<1x1x128xf32>
    %85 = vector.shape_cast %84 : vector<1x1x128xf32> to vector<1x128xf32>
    %86 = vector.broadcast %83 : vector<8x1xf32> to vector<8x128xf32>
    %87 = vector.broadcast %85 : vector<1x128xf32> to vector<8x128xf32>
    %88 = arith.subf %86, %87 : vector<8x128xf32>
    %89 = math.absf %88 : vector<8x128xf32>
    %90 = arith.addf %81, %89 : vector<8x128xf32>
    %c0_50 = arith.constant 0 : index
    %c0_51 = arith.constant 0 : index
    %c10 = arith.constant 10 : index
    %91 = vector.load %arg1[%c0_50, %c0_51, %c10] : memref<1x8x32xf32, #tpu.memory_space<vmem>>, vector<1x8x1xf32>
    %92 = vector.shape_cast %91 : vector<1x8x1xf32> to vector<8x1xf32>
    %c0_52 = arith.constant 0 : index
    %c10_53 = arith.constant 10 : index
    %c0_54 = arith.constant 0 : index
    %93 = vector.load %arg2[%c0_52, %c10_53, %c0_54] : memref<1x32x128xf32, #tpu.memory_space<vmem>>, vector<1x1x128xf32>
    %94 = vector.shape_cast %93 : vector<1x1x128xf32> to vector<1x128xf32>
    %95 = vector.broadcast %92 : vector<8x1xf32> to vector<8x128xf32>
    %96 = vector.broadcast %94 : vector<1x128xf32> to vector<8x128xf32>
    %97 = arith.subf %95, %96 : vector<8x128xf32>
    %98 = math.absf %97 : vector<8x128xf32>
    %99 = arith.addf %90, %98 : vector<8x128xf32>
    %c0_55 = arith.constant 0 : index
    %c0_56 = arith.constant 0 : index
    %c11 = arith.constant 11 : index
    %100 = vector.load %arg1[%c0_55, %c0_56, %c11] : memref<1x8x32xf32, #tpu.memory_space<vmem>>, vector<1x8x1xf32>
    %101 = vector.shape_cast %100 : vector<1x8x1xf32> to vector<8x1xf32>
    %c0_57 = arith.constant 0 : index
    %c11_58 = arith.constant 11 : index
    %c0_59 = arith.constant 0 : index
    %102 = vector.load %arg2[%c0_57, %c11_58, %c0_59] : memref<1x32x128xf32, #tpu.memory_space<vmem>>, vector<1x1x128xf32>
    %103 = vector.shape_cast %102 : vector<1x1x128xf32> to vector<1x128xf32>
    %104 = vector.broadcast %101 : vector<8x1xf32> to vector<8x128xf32>
    %105 = vector.broadcast %103 : vector<1x128xf32> to vector<8x128xf32>
    %106 = arith.subf %104, %105 : vector<8x128xf32>
    %107 = math.absf %106 : vector<8x128xf32>
    %108 = arith.addf %99, %107 : vector<8x128xf32>
    %c0_60 = arith.constant 0 : index
    %c0_61 = arith.constant 0 : index
    %c12 = arith.constant 12 : index
    %109 = vector.load %arg1[%c0_60, %c0_61, %c12] : memref<1x8x32xf32, #tpu.memory_space<vmem>>, vector<1x8x1xf32>
    %110 = vector.shape_cast %109 : vector<1x8x1xf32> to vector<8x1xf32>
    %c0_62 = arith.constant 0 : index
    %c12_63 = arith.constant 12 : index
    %c0_64 = arith.constant 0 : index
    %111 = vector.load %arg2[%c0_62, %c12_63, %c0_64] : memref<1x32x128xf32, #tpu.memory_space<vmem>>, vector<1x1x128xf32>
    %112 = vector.shape_cast %111 : vector<1x1x128xf32> to vector<1x128xf32>
    %113 = vector.broadcast %110 : vector<8x1xf32> to vector<8x128xf32>
    %114 = vector.broadcast %112 : vector<1x128xf32> to vector<8x128xf32>
    %115 = arith.subf %113, %114 : vector<8x128xf32>
    %116 = math.absf %115 : vector<8x128xf32>
    %117 = arith.addf %108, %116 : vector<8x128xf32>
    %c0_65 = arith.constant 0 : index
    %c0_66 = arith.constant 0 : index
    %c13 = arith.constant 13 : index
    %118 = vector.load %arg1[%c0_65, %c0_66, %c13] : memref<1x8x32xf32, #tpu.memory_space<vmem>>, vector<1x8x1xf32>
    %119 = vector.shape_cast %118 : vector<1x8x1xf32> to vector<8x1xf32>
    %c0_67 = arith.constant 0 : index
    %c13_68 = arith.constant 13 : index
    %c0_69 = arith.constant 0 : index
    %120 = vector.load %arg2[%c0_67, %c13_68, %c0_69] : memref<1x32x128xf32, #tpu.memory_space<vmem>>, vector<1x1x128xf32>
    %121 = vector.shape_cast %120 : vector<1x1x128xf32> to vector<1x128xf32>
    %122 = vector.broadcast %119 : vector<8x1xf32> to vector<8x128xf32>
    %123 = vector.broadcast %121 : vector<1x128xf32> to vector<8x128xf32>
    %124 = arith.subf %122, %123 : vector<8x128xf32>
    %125 = math.absf %124 : vector<8x128xf32>
    %126 = arith.addf %117, %125 : vector<8x128xf32>
    %c0_70 = arith.constant 0 : index
    %c0_71 = arith.constant 0 : index
    %c14 = arith.constant 14 : index
    %127 = vector.load %arg1[%c0_70, %c0_71, %c14] : memref<1x8x32xf32, #tpu.memory_space<vmem>>, vector<1x8x1xf32>
    %128 = vector.shape_cast %127 : vector<1x8x1xf32> to vector<8x1xf32>
    %c0_72 = arith.constant 0 : index
    %c14_73 = arith.constant 14 : index
    %c0_74 = arith.constant 0 : index
    %129 = vector.load %arg2[%c0_72, %c14_73, %c0_74] : memref<1x32x128xf32, #tpu.memory_space<vmem>>, vector<1x1x128xf32>
    %130 = vector.shape_cast %129 : vector<1x1x128xf32> to vector<1x128xf32>
    %131 = vector.broadcast %128 : vector<8x1xf32> to vector<8x128xf32>
    %132 = vector.broadcast %130 : vector<1x128xf32> to vector<8x128xf32>
    %133 = arith.subf %131, %132 : vector<8x128xf32>
    %134 = math.absf %133 : vector<8x128xf32>
    %135 = arith.addf %126, %134 : vector<8x128xf32>
    %c0_75 = arith.constant 0 : index
    %c0_76 = arith.constant 0 : index
    %c15 = arith.constant 15 : index
    %136 = vector.load %arg1[%c0_75, %c0_76, %c15] : memref<1x8x32xf32, #tpu.memory_space<vmem>>, vector<1x8x1xf32>
    %137 = vector.shape_cast %136 : vector<1x8x1xf32> to vector<8x1xf32>
    %c0_77 = arith.constant 0 : index
    %c15_78 = arith.constant 15 : index
    %c0_79 = arith.constant 0 : index
    %138 = vector.load %arg2[%c0_77, %c15_78, %c0_79] : memref<1x32x128xf32, #tpu.memory_space<vmem>>, vector<1x1x128xf32>
    %139 = vector.shape_cast %138 : vector<1x1x128xf32> to vector<1x128xf32>
    %140 = vector.broadcast %137 : vector<8x1xf32> to vector<8x128xf32>
    %141 = vector.broadcast %139 : vector<1x128xf32> to vector<8x128xf32>
    %142 = arith.subf %140, %141 : vector<8x128xf32>
    %143 = math.absf %142 : vector<8x128xf32>
    %144 = arith.addf %135, %143 : vector<8x128xf32>
    %c0_80 = arith.constant 0 : index
    %c0_81 = arith.constant 0 : index
    %c16 = arith.constant 16 : index
    %145 = vector.load %arg1[%c0_80, %c0_81, %c16] : memref<1x8x32xf32, #tpu.memory_space<vmem>>, vector<1x8x1xf32>
    %146 = vector.shape_cast %145 : vector<1x8x1xf32> to vector<8x1xf32>
    %c0_82 = arith.constant 0 : index
    %c16_83 = arith.constant 16 : index
    %c0_84 = arith.constant 0 : index
    %147 = vector.load %arg2[%c0_82, %c16_83, %c0_84] : memref<1x32x128xf32, #tpu.memory_space<vmem>>, vector<1x1x128xf32>
    %148 = vector.shape_cast %147 : vector<1x1x128xf32> to vector<1x128xf32>
    %149 = vector.broadcast %146 : vector<8x1xf32> to vector<8x128xf32>
    %150 = vector.broadcast %148 : vector<1x128xf32> to vector<8x128xf32>
    %151 = arith.subf %149, %150 : vector<8x128xf32>
    %152 = math.absf %151 : vector<8x128xf32>
    %153 = arith.addf %144, %152 : vector<8x128xf32>
    %c0_85 = arith.constant 0 : index
    %c0_86 = arith.constant 0 : index
    %c17 = arith.constant 17 : index
    %154 = vector.load %arg1[%c0_85, %c0_86, %c17] : memref<1x8x32xf32, #tpu.memory_space<vmem>>, vector<1x8x1xf32>
    %155 = vector.shape_cast %154 : vector<1x8x1xf32> to vector<8x1xf32>
    %c0_87 = arith.constant 0 : index
    %c17_88 = arith.constant 17 : index
    %c0_89 = arith.constant 0 : index
    %156 = vector.load %arg2[%c0_87, %c17_88, %c0_89] : memref<1x32x128xf32, #tpu.memory_space<vmem>>, vector<1x1x128xf32>
    %157 = vector.shape_cast %156 : vector<1x1x128xf32> to vector<1x128xf32>
    %158 = vector.broadcast %155 : vector<8x1xf32> to vector<8x128xf32>
    %159 = vector.broadcast %157 : vector<1x128xf32> to vector<8x128xf32>
    %160 = arith.subf %158, %159 : vector<8x128xf32>
    %161 = math.absf %160 : vector<8x128xf32>
    %162 = arith.addf %153, %161 : vector<8x128xf32>
    %c0_90 = arith.constant 0 : index
    %c0_91 = arith.constant 0 : index
    %c18 = arith.constant 18 : index
    %163 = vector.load %arg1[%c0_90, %c0_91, %c18] : memref<1x8x32xf32, #tpu.memory_space<vmem>>, vector<1x8x1xf32>
    %164 = vector.shape_cast %163 : vector<1x8x1xf32> to vector<8x1xf32>
    %c0_92 = arith.constant 0 : index
    %c18_93 = arith.constant 18 : index
    %c0_94 = arith.constant 0 : index
    %165 = vector.load %arg2[%c0_92, %c18_93, %c0_94] : memref<1x32x128xf32, #tpu.memory_space<vmem>>, vector<1x1x128xf32>
    %166 = vector.shape_cast %165 : vector<1x1x128xf32> to vector<1x128xf32>
    %167 = vector.broadcast %164 : vector<8x1xf32> to vector<8x128xf32>
    %168 = vector.broadcast %166 : vector<1x128xf32> to vector<8x128xf32>
    %169 = arith.subf %167, %168 : vector<8x128xf32>
    %170 = math.absf %169 : vector<8x128xf32>
    %171 = arith.addf %162, %170 : vector<8x128xf32>
    %c0_95 = arith.constant 0 : index
    %c0_96 = arith.constant 0 : index
    %c19 = arith.constant 19 : index
    %172 = vector.load %arg1[%c0_95, %c0_96, %c19] : memref<1x8x32xf32, #tpu.memory_space<vmem>>, vector<1x8x1xf32>
    %173 = vector.shape_cast %172 : vector<1x8x1xf32> to vector<8x1xf32>
    %c0_97 = arith.constant 0 : index
    %c19_98 = arith.constant 19 : index
    %c0_99 = arith.constant 0 : index
    %174 = vector.load %arg2[%c0_97, %c19_98, %c0_99] : memref<1x32x128xf32, #tpu.memory_space<vmem>>, vector<1x1x128xf32>
    %175 = vector.shape_cast %174 : vector<1x1x128xf32> to vector<1x128xf32>
    %176 = vector.broadcast %173 : vector<8x1xf32> to vector<8x128xf32>
    %177 = vector.broadcast %175 : vector<1x128xf32> to vector<8x128xf32>
    %178 = arith.subf %176, %177 : vector<8x128xf32>
    %179 = math.absf %178 : vector<8x128xf32>
    %180 = arith.addf %171, %179 : vector<8x128xf32>
    %c0_100 = arith.constant 0 : index
    %c0_101 = arith.constant 0 : index
    %c20 = arith.constant 20 : index
    %181 = vector.load %arg1[%c0_100, %c0_101, %c20] : memref<1x8x32xf32, #tpu.memory_space<vmem>>, vector<1x8x1xf32>
    %182 = vector.shape_cast %181 : vector<1x8x1xf32> to vector<8x1xf32>
    %c0_102 = arith.constant 0 : index
    %c20_103 = arith.constant 20 : index
    %c0_104 = arith.constant 0 : index
    %183 = vector.load %arg2[%c0_102, %c20_103, %c0_104] : memref<1x32x128xf32, #tpu.memory_space<vmem>>, vector<1x1x128xf32>
    %184 = vector.shape_cast %183 : vector<1x1x128xf32> to vector<1x128xf32>
    %185 = vector.broadcast %182 : vector<8x1xf32> to vector<8x128xf32>
    %186 = vector.broadcast %184 : vector<1x128xf32> to vector<8x128xf32>
    %187 = arith.subf %185, %186 : vector<8x128xf32>
    %188 = math.absf %187 : vector<8x128xf32>
    %189 = arith.addf %180, %188 : vector<8x128xf32>
    %c0_105 = arith.constant 0 : index
    %c0_106 = arith.constant 0 : index
    %c21 = arith.constant 21 : index
    %190 = vector.load %arg1[%c0_105, %c0_106, %c21] : memref<1x8x32xf32, #tpu.memory_space<vmem>>, vector<1x8x1xf32>
    %191 = vector.shape_cast %190 : vector<1x8x1xf32> to vector<8x1xf32>
    %c0_107 = arith.constant 0 : index
    %c21_108 = arith.constant 21 : index
    %c0_109 = arith.constant 0 : index
    %192 = vector.load %arg2[%c0_107, %c21_108, %c0_109] : memref<1x32x128xf32, #tpu.memory_space<vmem>>, vector<1x1x128xf32>
    %193 = vector.shape_cast %192 : vector<1x1x128xf32> to vector<1x128xf32>
    %194 = vector.broadcast %191 : vector<8x1xf32> to vector<8x128xf32>
    %195 = vector.broadcast %193 : vector<1x128xf32> to vector<8x128xf32>
    %196 = arith.subf %194, %195 : vector<8x128xf32>
    %197 = math.absf %196 : vector<8x128xf32>
    %198 = arith.addf %189, %197 : vector<8x128xf32>
    %c0_110 = arith.constant 0 : index
    %c0_111 = arith.constant 0 : index
    %c22 = arith.constant 22 : index
    %199 = vector.load %arg1[%c0_110, %c0_111, %c22] : memref<1x8x32xf32, #tpu.memory_space<vmem>>, vector<1x8x1xf32>
    %200 = vector.shape_cast %199 : vector<1x8x1xf32> to vector<8x1xf32>
    %c0_112 = arith.constant 0 : index
    %c22_113 = arith.constant 22 : index
    %c0_114 = arith.constant 0 : index
    %201 = vector.load %arg2[%c0_112, %c22_113, %c0_114] : memref<1x32x128xf32, #tpu.memory_space<vmem>>, vector<1x1x128xf32>
    %202 = vector.shape_cast %201 : vector<1x1x128xf32> to vector<1x128xf32>
    %203 = vector.broadcast %200 : vector<8x1xf32> to vector<8x128xf32>
    %204 = vector.broadcast %202 : vector<1x128xf32> to vector<8x128xf32>
    %205 = arith.subf %203, %204 : vector<8x128xf32>
    %206 = math.absf %205 : vector<8x128xf32>
    %207 = arith.addf %198, %206 : vector<8x128xf32>
    %c0_115 = arith.constant 0 : index
    %c0_116 = arith.constant 0 : index
    %c23 = arith.constant 23 : index
    %208 = vector.load %arg1[%c0_115, %c0_116, %c23] : memref<1x8x32xf32, #tpu.memory_space<vmem>>, vector<1x8x1xf32>
    %209 = vector.shape_cast %208 : vector<1x8x1xf32> to vector<8x1xf32>
    %c0_117 = arith.constant 0 : index
    %c23_118 = arith.constant 23 : index
    %c0_119 = arith.constant 0 : index
    %210 = vector.load %arg2[%c0_117, %c23_118, %c0_119] : memref<1x32x128xf32, #tpu.memory_space<vmem>>, vector<1x1x128xf32>
    %211 = vector.shape_cast %210 : vector<1x1x128xf32> to vector<1x128xf32>
    %212 = vector.broadcast %209 : vector<8x1xf32> to vector<8x128xf32>
    %213 = vector.broadcast %211 : vector<1x128xf32> to vector<8x128xf32>
    %214 = arith.subf %212, %213 : vector<8x128xf32>
    %215 = math.absf %214 : vector<8x128xf32>
    %216 = arith.addf %207, %215 : vector<8x128xf32>
    %c0_120 = arith.constant 0 : index
    %c0_121 = arith.constant 0 : index
    %c24 = arith.constant 24 : index
    %217 = vector.load %arg1[%c0_120, %c0_121, %c24] : memref<1x8x32xf32, #tpu.memory_space<vmem>>, vector<1x8x1xf32>
    %218 = vector.shape_cast %217 : vector<1x8x1xf32> to vector<8x1xf32>
    %c0_122 = arith.constant 0 : index
    %c24_123 = arith.constant 24 : index
    %c0_124 = arith.constant 0 : index
    %219 = vector.load %arg2[%c0_122, %c24_123, %c0_124] : memref<1x32x128xf32, #tpu.memory_space<vmem>>, vector<1x1x128xf32>
    %220 = vector.shape_cast %219 : vector<1x1x128xf32> to vector<1x128xf32>
    %221 = vector.broadcast %218 : vector<8x1xf32> to vector<8x128xf32>
    %222 = vector.broadcast %220 : vector<1x128xf32> to vector<8x128xf32>
    %223 = arith.subf %221, %222 : vector<8x128xf32>
    %224 = math.absf %223 : vector<8x128xf32>
    %225 = arith.addf %216, %224 : vector<8x128xf32>
    %c0_125 = arith.constant 0 : index
    %c0_126 = arith.constant 0 : index
    %c25 = arith.constant 25 : index
    %226 = vector.load %arg1[%c0_125, %c0_126, %c25] : memref<1x8x32xf32, #tpu.memory_space<vmem>>, vector<1x8x1xf32>
    %227 = vector.shape_cast %226 : vector<1x8x1xf32> to vector<8x1xf32>
    %c0_127 = arith.constant 0 : index
    %c25_128 = arith.constant 25 : index
    %c0_129 = arith.constant 0 : index
    %228 = vector.load %arg2[%c0_127, %c25_128, %c0_129] : memref<1x32x128xf32, #tpu.memory_space<vmem>>, vector<1x1x128xf32>
    %229 = vector.shape_cast %228 : vector<1x1x128xf32> to vector<1x128xf32>
    %230 = vector.broadcast %227 : vector<8x1xf32> to vector<8x128xf32>
    %231 = vector.broadcast %229 : vector<1x128xf32> to vector<8x128xf32>
    %232 = arith.subf %230, %231 : vector<8x128xf32>
    %233 = math.absf %232 : vector<8x128xf32>
    %234 = arith.addf %225, %233 : vector<8x128xf32>
    %c0_130 = arith.constant 0 : index
    %c0_131 = arith.constant 0 : index
    %c26 = arith.constant 26 : index
    %235 = vector.load %arg1[%c0_130, %c0_131, %c26] : memref<1x8x32xf32, #tpu.memory_space<vmem>>, vector<1x8x1xf32>
    %236 = vector.shape_cast %235 : vector<1x8x1xf32> to vector<8x1xf32>
    %c0_132 = arith.constant 0 : index
    %c26_133 = arith.constant 26 : index
    %c0_134 = arith.constant 0 : index
    %237 = vector.load %arg2[%c0_132, %c26_133, %c0_134] : memref<1x32x128xf32, #tpu.memory_space<vmem>>, vector<1x1x128xf32>
    %238 = vector.shape_cast %237 : vector<1x1x128xf32> to vector<1x128xf32>
    %239 = vector.broadcast %236 : vector<8x1xf32> to vector<8x128xf32>
    %240 = vector.broadcast %238 : vector<1x128xf32> to vector<8x128xf32>
    %241 = arith.subf %239, %240 : vector<8x128xf32>
    %242 = math.absf %241 : vector<8x128xf32>
    %243 = arith.addf %234, %242 : vector<8x128xf32>
    %c0_135 = arith.constant 0 : index
    %c0_136 = arith.constant 0 : index
    %c27 = arith.constant 27 : index
    %244 = vector.load %arg1[%c0_135, %c0_136, %c27] : memref<1x8x32xf32, #tpu.memory_space<vmem>>, vector<1x8x1xf32>
    %245 = vector.shape_cast %244 : vector<1x8x1xf32> to vector<8x1xf32>
    %c0_137 = arith.constant 0 : index
    %c27_138 = arith.constant 27 : index
    %c0_139 = arith.constant 0 : index
    %246 = vector.load %arg2[%c0_137, %c27_138, %c0_139] : memref<1x32x128xf32, #tpu.memory_space<vmem>>, vector<1x1x128xf32>
    %247 = vector.shape_cast %246 : vector<1x1x128xf32> to vector<1x128xf32>
    %248 = vector.broadcast %245 : vector<8x1xf32> to vector<8x128xf32>
    %249 = vector.broadcast %247 : vector<1x128xf32> to vector<8x128xf32>
    %250 = arith.subf %248, %249 : vector<8x128xf32>
    %251 = math.absf %250 : vector<8x128xf32>
    %252 = arith.addf %243, %251 : vector<8x128xf32>
    %c0_140 = arith.constant 0 : index
    %c0_141 = arith.constant 0 : index
    %c28 = arith.constant 28 : index
    %253 = vector.load %arg1[%c0_140, %c0_141, %c28] : memref<1x8x32xf32, #tpu.memory_space<vmem>>, vector<1x8x1xf32>
    %254 = vector.shape_cast %253 : vector<1x8x1xf32> to vector<8x1xf32>
    %c0_142 = arith.constant 0 : index
    %c28_143 = arith.constant 28 : index
    %c0_144 = arith.constant 0 : index
    %255 = vector.load %arg2[%c0_142, %c28_143, %c0_144] : memref<1x32x128xf32, #tpu.memory_space<vmem>>, vector<1x1x128xf32>
    %256 = vector.shape_cast %255 : vector<1x1x128xf32> to vector<1x128xf32>
    %257 = vector.broadcast %254 : vector<8x1xf32> to vector<8x128xf32>
    %258 = vector.broadcast %256 : vector<1x128xf32> to vector<8x128xf32>
    %259 = arith.subf %257, %258 : vector<8x128xf32>
    %260 = math.absf %259 : vector<8x128xf32>
    %261 = arith.addf %252, %260 : vector<8x128xf32>
    %c0_145 = arith.constant 0 : index
    %c0_146 = arith.constant 0 : index
    %c29 = arith.constant 29 : index
    %262 = vector.load %arg1[%c0_145, %c0_146, %c29] : memref<1x8x32xf32, #tpu.memory_space<vmem>>, vector<1x8x1xf32>
    %263 = vector.shape_cast %262 : vector<1x8x1xf32> to vector<8x1xf32>
    %c0_147 = arith.constant 0 : index
    %c29_148 = arith.constant 29 : index
    %c0_149 = arith.constant 0 : index
    %264 = vector.load %arg2[%c0_147, %c29_148, %c0_149] : memref<1x32x128xf32, #tpu.memory_space<vmem>>, vector<1x1x128xf32>
    %265 = vector.shape_cast %264 : vector<1x1x128xf32> to vector<1x128xf32>
    %266 = vector.broadcast %263 : vector<8x1xf32> to vector<8x128xf32>
    %267 = vector.broadcast %265 : vector<1x128xf32> to vector<8x128xf32>
    %268 = arith.subf %266, %267 : vector<8x128xf32>
    %269 = math.absf %268 : vector<8x128xf32>
    %270 = arith.addf %261, %269 : vector<8x128xf32>
    %c0_150 = arith.constant 0 : index
    %c0_151 = arith.constant 0 : index
    %c30 = arith.constant 30 : index
    %271 = vector.load %arg1[%c0_150, %c0_151, %c30] : memref<1x8x32xf32, #tpu.memory_space<vmem>>, vector<1x8x1xf32>
    %272 = vector.shape_cast %271 : vector<1x8x1xf32> to vector<8x1xf32>
    %c0_152 = arith.constant 0 : index
    %c30_153 = arith.constant 30 : index
    %c0_154 = arith.constant 0 : index
    %273 = vector.load %arg2[%c0_152, %c30_153, %c0_154] : memref<1x32x128xf32, #tpu.memory_space<vmem>>, vector<1x1x128xf32>
    %274 = vector.shape_cast %273 : vector<1x1x128xf32> to vector<1x128xf32>
    %275 = vector.broadcast %272 : vector<8x1xf32> to vector<8x128xf32>
    %276 = vector.broadcast %274 : vector<1x128xf32> to vector<8x128xf32>
    %277 = arith.subf %275, %276 : vector<8x128xf32>
    %278 = math.absf %277 : vector<8x128xf32>
    %279 = arith.addf %270, %278 : vector<8x128xf32>
    %c0_155 = arith.constant 0 : index
    %c0_156 = arith.constant 0 : index
    %c31 = arith.constant 31 : index
    %280 = vector.load %arg1[%c0_155, %c0_156, %c31] : memref<1x8x32xf32, #tpu.memory_space<vmem>>, vector<1x8x1xf32>
    %281 = vector.shape_cast %280 : vector<1x8x1xf32> to vector<8x1xf32>
    %c0_157 = arith.constant 0 : index
    %c31_158 = arith.constant 31 : index
    %c0_159 = arith.constant 0 : index
    %282 = vector.load %arg2[%c0_157, %c31_158, %c0_159] : memref<1x32x128xf32, #tpu.memory_space<vmem>>, vector<1x1x128xf32>
    %283 = vector.shape_cast %282 : vector<1x1x128xf32> to vector<1x128xf32>
    %284 = vector.broadcast %281 : vector<8x1xf32> to vector<8x128xf32>
    %285 = vector.broadcast %283 : vector<1x128xf32> to vector<8x128xf32>
    %286 = arith.subf %284, %285 : vector<8x128xf32>
    %287 = math.absf %286 : vector<8x128xf32>
    %288 = arith.addf %279, %287 : vector<8x128xf32>
    %cst_160 = arith.constant -1.000000e+01 : f32
    %289 = vector.broadcast %cst_160 : f32 to vector<8x128xf32>
    %290 = arith.mulf %288, %289 : vector<8x128xf32>
    %c0_161 = arith.constant 0 : index
    %c0_162 = arith.constant 0 : index
    %291 = vector.load %arg6[%c0_161, %c0_162] : memref<8x128xf32, #tpu.memory_space<vmem>>, vector<8x128xf32>
    tpu.vector_store %arg6[%c0_161, %c0_162], %290 {strides = array<i32>} : memref<8x128xf32, #tpu.memory_space<vmem>>, vector<8x128xf32>,
    %292 = vector.extract_strided_slice %288 {offsets = [0, 0], sizes = [8, 8], strides = [1, 1]} : vector<8x128xf32> to vector<8x8xf32>
    %c0_163 = arith.constant 0 : index
    %c0_164 = arith.constant 0 : index
    %c0_165 = arith.constant 0 : index
    %293 = vector.load %arg5[%c0_163, %c0_164, %c0_165] : memref<1x8x8xf32, #tpu.memory_space<vmem>>, vector<1x8x8xf32>
    %294 = vector.shape_cast %293 : vector<1x8x8xf32> to vector<8x8xf32>
    %295 = vector.shape_cast %292 : vector<8x8xf32> to vector<1x8x8xf32>
    tpu.vector_store %arg5[%c0_163, %c0_164, %c0_165], %295 {strides = array<i32>} : memref<1x8x8xf32, #tpu.memory_space<vmem>>, vector<1x8x8xf32>,
    %296 = tpu.iota {dimensions = array<i32: 0>} : vector<8x1xi32>
    %297 = tpu.iota {dimensions = array<i32: 1>} : vector<1x128xi32>
    %c8_i32 = arith.constant 8 : i32
    %298 = vector.broadcast %c8_i32 : i32 to vector<8x1xi32>
    %299 = arith.cmpi slt, %296, %298 : vector<8x1xi32>
    %c8_i32_166 = arith.constant 8 : i32
    %300 = vector.broadcast %c8_i32_166 : i32 to vector<1x128xi32>
    %301 = arith.cmpi slt, %297, %300 : vector<1x128xi32>
    %cst_167 = arith.constant 0.000000e+00 : f32
    %cst_168 = arith.constant -1.000000e+30 : f32
    %302 = vector.broadcast %cst_167 : f32 to vector<8x1xf32>
    %303 = vector.broadcast %cst_168 : f32 to vector<8x1xf32>
    %304 = arith.select %299, %302, %303 : vector<8x1xi1>, vector<8x1xf32>
    %cst_169 = arith.constant 0.000000e+00 : f32
    %cst_170 = arith.constant -1.000000e+30 : f32
    %305 = vector.broadcast %cst_169 : f32 to vector<1x128xf32>
    %306 = vector.broadcast %cst_170 : f32 to vector<1x128xf32>
    %307 = arith.select %301, %305, %306 : vector<1x128xi1>, vector<1x128xf32>
    %308 = arith.extui %299 : vector<8x1xi1> to vector<8x1xi32>
    %309 = arith.sitofp %308 : vector<8x1xi32> to vector<8x1xf32>
    %cst_171 = arith.constant 0.000000e+00 : f32
    %310 = vector.broadcast %cst_171 : f32 to vector<8x1xf32>
    %cst_172 = arith.constant 0.000000e+00 : f32
    %311 = vector.broadcast %cst_172 : f32 to vector<1x128xf32>
    %cst_173 = arith.constant -2.07944155 : f32
    %cst_174 = arith.constant -2.07944155 : f32
    %c0_i32 = arith.constant 0 : i32
    %cst_175 = arith.constant 1.000000e+30 : f32
    %312:4 = scf.while (%arg7 = %c0_i32, %arg8 = %310, %arg9 = %311, %arg10 = %cst_175) : (i32, vector<8x1xf32>, vector<1x128xf32>, f32) -> (i32, vector<8x1xf32>, vector<1x128xf32>, f32) {
      %c50_i32 = arith.constant 50 : i32
      %341 = arith.cmpi slt, %arg7, %c50_i32 : i32
      %cst_188 = arith.constant 1.000000e-01 : f32
      %342 = arith.cmpf oge, %arg10, %cst_188 : f32
      %343 = arith.andi %341, %342 : i1
      scf.condition(%343) %arg7, %arg8, %arg9, %arg10 : i32, vector<8x1xf32>, vector<1x128xf32>, f32
    } do {
    ^bb0(%arg7: i32, %arg8: vector<8x1xf32>, %arg9: vector<1x128xf32>, %arg10: f32):
      %c0_188 = arith.constant 0 : index
      %c0_189 = arith.constant 0 : index
      %341 = vector.load %arg6[%c0_188, %c0_189] : memref<8x128xf32, #tpu.memory_space<vmem>>, vector<8x128xf32>
      %342 = vector.broadcast %arg8 : vector<8x1xf32> to vector<8x128xf32>
      %343 = arith.addf %341, %342 : vector<8x128xf32>
      %344 = arith.addf %arg9, %307 : vector<1x128xf32>
      %345 = vector.broadcast %344 : vector<1x128xf32> to vector<8x128xf32>
      %346 = arith.addf %343, %345 : vector<8x128xf32>
      %cst_190 = arith.constant dense<0xFF800000> : vector<8xf32>
      %347 = vector.multi_reduction <maximumf>, %346, %cst_190 [1] : vector<8x128xf32> to vector<8xf32>
      %348 = vector.shape_cast %347 : vector<8xf32> to vector<8x1xf32>
      %349 = vector.broadcast %348 : vector<8x1xf32> to vector<8x128xf32>
      %350 = arith.subf %346, %349 : vector<8x128xf32>
      %351 = math.exp %350 : vector<8x128xf32>
      %cst_191 = arith.constant dense<0.000000e+00> : vector<8xf32>
      %352 = vector.multi_reduction <add>, %351, %cst_191 [1] : vector<8x128xf32> to vector<8xf32>
      %353 = vector.shape_cast %352 : vector<8xf32> to vector<8x1xf32>
      %354 = math.log %353 : vector<8x1xf32>
      %355 = arith.addf %348, %354 : vector<8x1xf32>
      %356 = vector.broadcast %cst_173 : f32 to vector<8x1xf32>
      %357 = arith.subf %356, %355 : vector<8x1xf32>
      %358 = arith.addf %357, %arg8 : vector<8x1xf32>
      %359 = arith.addf %358, %304 : vector<8x1xf32>
      %360 = vector.broadcast %359 : vector<8x1xf32> to vector<8x128xf32>
      %361 = arith.addf %341, %360 : vector<8x128xf32>
      %362 = vector.broadcast %arg9 : vector<1x128xf32> to vector<8x128xf32>
      %363 = arith.addf %361, %362 : vector<8x128xf32>
      %cst_192 = arith.constant dense<0xFF800000> : vector<128xf32>
      %364 = vector.multi_reduction <maximumf>, %363, %cst_192 [0] : vector<8x128xf32> to vector<128xf32>
      %365 = vector.shape_cast %364 : vector<128xf32> to vector<1x128xf32>
      %366 = vector.broadcast %365 : vector<1x128xf32> to vector<8x128xf32>
      %367 = arith.subf %363, %366 : vector<8x128xf32>
      %368 = math.exp %367 : vector<8x128xf32>
      %cst_193 = arith.constant dense<0.000000e+00> : vector<128xf32>
      %369 = vector.multi_reduction <add>, %368, %cst_193 [0] : vector<8x128xf32> to vector<128xf32>
      %370 = vector.shape_cast %369 : vector<128xf32> to vector<1x128xf32>
      %371 = math.log %370 : vector<1x128xf32>
      %372 = arith.addf %365, %371 : vector<1x128xf32>
      %373 = vector.broadcast %cst_174 : f32 to vector<1x128xf32>
      %374 = arith.subf %373, %372 : vector<1x128xf32>
      %375 = arith.addf %374, %arg9 : vector<1x128xf32>
      %376 = arith.subf %358, %arg8 : vector<8x1xf32>
      %377 = math.absf %376 : vector<8x1xf32>
      %378 = arith.mulf %377, %309 : vector<8x1xf32>
      %379 = vector.shape_cast %378 : vector<8x1xf32> to vector<1x8x1xf32>
      %cst_194 = arith.constant dense<0.000000e+00> : vector<1xf32>
      %380 = vector.multi_reduction <add>, %379, %cst_194 [1, 2] : vector<1x8x1xf32> to vector<1xf32>
      %381 = vector.shape_cast %380 : vector<1xf32> to vector<1x1x1xf32>
      %382 = vector.extract %381[0, 0, 0] : f32 from vector<1x1x1xf32>
      %cst_195 = arith.constant 1.000000e-01 : f32
      %383 = arith.mulf %cst_195, %382 : f32
      %c1_i32 = arith.constant 1 : i32
      %384 = arith.addi %arg7, %c1_i32 : i32
      scf.yield %384, %358, %375, %383 : i32, vector<8x1xf32>, vector<1x128xf32>, f32
    }
    %c0_176 = arith.constant 0 : index
    %c0_177 = arith.constant 0 : index
    %313 = vector.load %arg6[%c0_176, %c0_177] : memref<8x128xf32, #tpu.memory_space<vmem>>, vector<8x128xf32>
    %314 = vector.broadcast %312#1 : vector<8x1xf32> to vector<8x128xf32>
    %315 = arith.addf %313, %314 : vector<8x128xf32>
    %316 = vector.broadcast %312#2 : vector<1x128xf32> to vector<8x128xf32>
    %317 = arith.addf %315, %316 : vector<8x128xf32>
    %318 = vector.broadcast %299 : vector<8x1xi1> to vector<8x128xi1>
    %319 = vector.broadcast %301 : vector<1x128xi1> to vector<8x128xi1>
    %320 = arith.andi %318, %319 : vector<8x128xi1>
    %cst_178 = arith.constant 1.000000e+00 : f32
    %cst_179 = arith.constant 0.000000e+00 : f32
    %321 = vector.broadcast %cst_178 : f32 to vector<8x128xf32>
    %322 = vector.broadcast %cst_179 : f32 to vector<8x128xf32>
    %323 = arith.select %320, %321, %322 : vector<8x128xi1>, vector<8x128xf32>
    %324 = math.exp %317 : vector<8x128xf32>
    %325 = arith.mulf %324, %323 : vector<8x128xf32>
    %326 = vector.extract_strided_slice %325 {offsets = [0, 0], sizes = [8, 8], strides = [1, 1]} : vector<8x128xf32> to vector<8x8xf32>
    %c0_180 = arith.constant 0 : index
    %c0_181 = arith.constant 0 : index
    %c0_182 = arith.constant 0 : index
    %327 = vector.load %arg4[%c0_180, %c0_181, %c0_182] : memref<1x8x8xf32, #tpu.memory_space<vmem>>, vector<1x8x8xf32>
    %328 = vector.shape_cast %327 : vector<1x8x8xf32> to vector<8x8xf32>
    %329 = vector.shape_cast %326 : vector<8x8xf32> to vector<1x8x8xf32>
    tpu.vector_store %arg4[%c0_180, %c0_181, %c0_182], %329 {strides = array<i32>} : memref<1x8x8xf32, #tpu.memory_space<vmem>>, vector<1x8x8xf32>,
    %330 = arith.mulf %325, %313 : vector<8x128xf32>
    %331 = vector.shape_cast %330 : vector<8x128xf32> to vector<1x8x128xf32>
    %cst_183 = arith.constant dense<0.000000e+00> : vector<1xf32>
    %332 = vector.multi_reduction <add>, %331, %cst_183 [1, 2] : vector<1x8x128xf32> to vector<1xf32>
    %333 = vector.shape_cast %332 : vector<1xf32> to vector<1x1x1xf32>
    %334 = vector.extract %333[0, 0, 0] : f32 from vector<1x1x1xf32>
    %335 = vector.broadcast %334 : f32 to vector<1x1xf32>
    %cst_184 = arith.constant -1.000000e-01 : f32
    %336 = vector.broadcast %cst_184 : f32 to vector<1x1xf32>
    %337 = arith.mulf %336, %335 : vector<1x1xf32>
    %c0_185 = arith.constant 0 : index
    %c0_186 = arith.constant 0 : index
    %c0_187 = arith.constant 0 : index
    %338 = vector.load %arg3[%c0_185, %c0_186, %c0_187] : memref<1x1x1xf32, #tpu.memory_space<vmem>>, vector<1x1x1xf32>
    %339 = vector.shape_cast %338 : vector<1x1x1xf32> to vector<1x1xf32>
    %340 = vector.shape_cast %337 : vector<1x1xf32> to vector<1x1x1xf32>
    tpu.vector_store %arg3[%c0_185, %c0_186, %c0_187], %340 {strides = array<i32>} : memref<1x1x1xf32, #tpu.memory_space<vmem>>, vector<1x1x1xf32>,
    return
  }
  func.func @transform_0(%arg0: i32) -> (i32, i32, i32) {
    %c0_i32 = arith.constant 0 : i32
    %c0_i32_0 = arith.constant 0 : i32
    %c0_i32_1 = arith.constant 0 : i32
    return %arg0, %c0_i32, %c0_i32_0 : i32, i32, i32
  }
  func.func @transform_1(%arg0: i32) -> (i32, i32, i32) {
    %c0_i32 = arith.constant 0 : i32
    %c0_i32_0 = arith.constant 0 : i32
    %c0_i32_1 = arith.constant 0 : i32
    return %arg0, %c0_i32, %c0_i32_0 : i32, i32, i32
  }
  func.func @transform_2(%arg0: i32) -> (i32, i32, i32) {
    %c0_i32 = arith.constant 0 : i32
    %c0_i32_0 = arith.constant 0 : i32
    %c0_i32_1 = arith.constant 0 : i32
    return %arg0, %c0_i32, %c0_i32_0 : i32, i32, i32
  }
  func.func @transform_3(%arg0: i32) -> (i32, i32, i32) {
    %c0_i32 = arith.constant 0 : i32
    %c0_i32_0 = arith.constant 0 : i32
    %c0_i32_1 = arith.constant 0 : i32
    return %arg0, %c0_i32, %c0_i32_0 : i32, i32, i32
  }
  func.func @transform_4(%arg0: i32) -> (i32, i32, i32) {
    %c0_i32 = arith.constant 0 : i32
    %c0_i32_0 = arith.constant 0 : i32
    %c0_i32_1 = arith.constant 0 : i32
    return %arg0, %c0_i32, %c0_i32_0 : i32, i32, i32
  }
}

</mosaic_0001>

<bundles_post_ra>
// kernel: _sinkhorn_pallas.1
= control target key start
LH: loop header
LB: loop body
LE: loop exit
PB: predicated region body
PF: predicated region fallthrough
CT: control target
= control target key end

     0   :  { %s1411_s0 = inlined_call_operand.vmem [shape: f32[2,8,32], index: 0, kind: input, shape index: {}]   ;;  %s1412_s1 = inlined_call_operand.vmem [shape: f32[2,32,128], index: 1, kind: input, shape index: {}]   ;;  %s1413_s2 = inlined_call_operand.vmem [shape: f32[2,1,1], index: 2, kind: output, shape index: {0}]   ;;  %s1414_s3 = inlined_call_operand.hbm [shape: f32[2,8,8], index: 3, kind: output, shape index: {1}]   ;;  %s1415_s4 = inlined_call_operand.hbm [shape: f32[2,8,8], index: 4, kind: output, shape index: {2}]  }
   0x1   :  { %1416 = sst [smem:[#allocation9_spill]] %s1411_s0 }
   0x2   :  { %10 = vsyncpa [#allocation4], 0 }
   0x3   :  { %12 = vsyncpa [#allocation4 + $0x1], 0 }
   0x4   :  { %13 = vsyncpa [#allocation6], 0 }
   0x5   :  { %15 = vsyncpa [#allocation6 + $0x1], 0  ;;  %s1182_s15 = smov 0   ;;  %s1184_s16 = smov 0  }
   0x6   :  { %s1186_s17 = smov 0   ;;  %s1188_s18 = smov 0  }
   0x7 LB: > { %s1203_s19 = sadd.s32 4294967295, %s1109_s18   ;;  %s806_s20 = sadd.s32 4294967294, %s1109_s18   ;;  %s1109_s18 = sphi %s1188_s18, %s1426_s18   ;;  %s1105_s17 = sphi %s1186_s17, %s1425_s17   ;;  %s1101_s16 = sphi %s1184_s16, %s1424_s16   ;;  %s1097_s15 = sphi %s1182_s15, %s1423_s15  }
   0x8   : > { %s1207_s21 = sadd.s32 1, %s1109_s18   ;;  %s106_s22 = sadd.s32 1, %s1105_s17 }
   0x9   : > { %s103_s23 = ssub.s32 %s1109_s18, %s1207_s21  ;;  %p116_p0 = scmp.ne.s32.totalorder %s1105_s17, %s1101_s16 }
   0xa   : > { %p104_p1 = scmp.eq.s32.totalorder %s103_s23, 0  ;;  %p117_p2 = scmp.eq.s32.totalorder %s1203_s19, 1 }
   0xb   : > { %p122_p3 = scmp.ne.s32.totalorder %s1101_s16, %s1097_s15  ;;  %p123_p4 = scmp.eq.s32.totalorder %s806_s20, 1 }
   0xc   : > { %s1218_s24 = scalar_select %p104_p1, %s1105_s17, %s106_s22  }
   0xd   : > { %p1220_p5 = por %p117_p2, %p116_p0  ;;  %p1224_p6 = por %p123_p4, %p122_p3 }
   0xe   : > { %p809_p7 = scmp.ge.s32.totalorder %s1109_s18, 1  ;;  %p182_p8 = scmp.lt.s32.totalorder %s1109_s18, 3 }
  0x10   : > { %p183_p9 = pnand %p809_p7, %p182_p8 }
  0x11   : > { %p220_p10 = scmp.lt.s32.totalorder (!%p183_p9), %s1203_s19, 1  ;;  %s1419_s0 = sld [smem:[#allocation9_spill]] (!%p183_p9) }
  0x12   : > { %186 = sbr.rel (%p183_p9) target bundleno = 917 (0x395), region = 28  ;;  %s1280_s13 = sand.u32 (!%p183_p9), 1, %s1101_s16  }
  0x13   : > { %s810_s14 = sshll.u32 (!%p183_p9), %s1280_s13, 3  ;;  %s1339_s23 = smov (!%p183_p9), 0  }
  0x14   : > { %s1327_s20 = scalar_lea.vmem (!%p183_p9), [#allocation5], %s810_s14  ;;  %s1333_s22 = scalar_lea.vmem (!%p183_p9), [#allocation3], %s810_s14 }
  0x17   : > { %v1123_v0 = vmov 2   ;;  %v1124_v1 = vmov 0   ;;  %s1232_s27 = scalar_select %p220_p10, %s1203_s19, 1  ;;  %v1125_v2 = vmov 4   ;;  %v1126_v4 = vmov 3  }
  0x18   : > { %930 = vset.pattern.permute.xlu1 %v1123_v0  ;;  %928 = vset.pattern.permute.xlu0 %v1124_v1  ;;  %v1127_v5 = vmov 1   ;;  %v1128_v6 = vmov 5   ;;  %v1129_v7 = vmov 6   ;;  %v1130_v8 = vmov 8  }
  0x19   : > { %932 = vset.pattern.permute.xlu2 %v1125_v2  ;;  %s812_s28 = sshll.u32 %s1232_s27, 3  ;;  %s821_s9 = sshll.u32 %s1232_s27, 5  ;;  %v1131_v9 = vmov 7   ;;  %v1132_v10 = vmov 9   ;;  %v1133_v11 = vmov 13   ;;  %v1134_v12 = vmov 10  }
  0x1a   : > { %s223_s8 = scalar_lea.vmem %s1419_s0, %s812_s28  ;;  %s1248_s12 = scalar_lea.vmem %s1412_s1, %s821_s9  ;;  %v1135_v13 = vmov 11   ;;  %v1136_v14 = vmov 18   ;;  %v1137_v15 = vmov 12   ;;  %v1138_v16 = vmov 14  }
  0x1b   : > { %v1243_v3 = vld [vmem:[%s223_s8] sm:$0xff]  ;;  %v1139_v17 = vmov 23   ;;  %v1140_v18 = vmov 15   ;;  %v1141_v19 = vmov 16   ;;  %v1142_v20 = vmov 17  }
  0x1c   : > { %254 = vperm.xlu1 %930, %v1243_v3   ;;  %236 = vperm.xlu0 %928, %v1243_v3   ;;  %v1143_v21 = vmov 28   ;;  %v1144_v22 = vmov 19   ;;  %v1145_v23 = vmov 20   ;;  %v1146_v24 = vmov 31   ;;  %v962_v37 = vld [vmem:[%s1248_s12] ss:$0 sm:$0xff] }
  0x1d   : > { %272 = vperm.xlu2 %932, %v1243_v3   ;;  %v1147_v25 = vmov 21   ;;  %v1148_v26 = vmov 22   ;;  %v1149_v27 = vmov 24   ;;  %v1150_v28 = vmov 25   ;;  %v965_v39 = vld [vmem:[%s1248_s12 + $0x1] ss:$0 sm:$0xff] }
  0x1e   : > { %v1151_v29 = vmov 26   ;;  %v1152_v30 = vmov 27   ;;  %v1153_v31 = vmov 29   ;;  %v1154_v32 = vmov 30   ;;  %v961_v40 = vld [vmem:[%s1248_s12 + $0x2] ss:$0 sm:$0xff] }
  0x1f   : > { %v964_v47 = vld [vmem:[%s1248_s12 + $0x3] ss:$0 sm:$0xff]  ;;  %v963_v51 = vld [vmem:[%s1248_s12 + $0x4] ss:$0 sm:$0xff]  ;;  %v966_v54 = vld [vmem:[%s1248_s12 + $0x5] ss:$0 sm:$0xff] }
  0x20   : > { %v967_v61 = vld [vmem:[%s1248_s12 + $0x6] ss:$0 sm:$0xff]  ;;  %v968_v2 = vld [vmem:[%s1248_s12 + $0x7] ss:$0 sm:$0xff]  ;;  %vm524_vm1 = vcmask 64512  }
  0x24   : > { %931 = vset.pattern.permute.xlu1 %v1126_v4  ;;  %929 = vset.pattern.permute.xlu0 %v1127_v5 }
  0x25   : > { %263 = vperm.xlu1 %931, %v1243_v3   ;;  %245 = vperm.xlu0 %929, %v1243_v3  }
  0x26   : > { %933 = vset.pattern.permute.xlu2 %v1128_v6 }
  0x27   : > { %281 = vperm.xlu2 %933, %v1243_v3  }
  0x2d   : > { %934 = vset.pattern.permute.xlu1 %v1129_v7  ;;  %936 = vset.pattern.permute.xlu0 %v1130_v8  ;;  %v969_v7 = vld [vmem:[%s1248_s12 + $0x8] ss:$0 sm:$0xff] }
  0x2e   : > { %290 = vperm.xlu1 %934, %v1243_v3   ;;  %308 = vperm.xlu0 %936, %v1243_v3  }
  0x2f   : > { %935 = vset.pattern.permute.xlu2 %v1131_v9 }
  0x30   : > { %299 = vperm.xlu2 %935, %v1243_v3  }
  0x36   : > { %937 = vset.pattern.permute.xlu1 %v1132_v10  ;;  %941 = vset.pattern.permute.xlu0 %v1133_v11  ;;  %v970_v10 = vld [vmem:[%s1248_s12 + $0x9] ss:$0 sm:$0xff] }
  0x37   : > { %317 = vperm.xlu1 %937, %v1243_v3   ;;  %353 = vperm.xlu0 %941, %v1243_v3  }
  0x38   : > { %938 = vset.pattern.permute.xlu2 %v1134_v12 }
  0x39   : > { %326 = vperm.xlu2 %938, %v1243_v3  }
  0x3f   : > { %939 = vset.pattern.permute.xlu1 %v1135_v13  ;;  %946 = vset.pattern.permute.xlu0 %v1136_v14 }
  0x40   : > { %335 = vperm.xlu1 %939, %v1243_v3   ;;  %398 = vperm.xlu0 %946, %v1243_v3  }
  0x41   : > { %940 = vset.pattern.permute.xlu2 %v1137_v15  ;;  %v971_v15 = vld [vmem:[%s1248_s12 + $0xa] ss:$0 sm:$0xff] }
  0x42   : > { %344 = vperm.xlu2 %940, %v1243_v3  }
  0x48   : > { %942 = vset.pattern.permute.xlu1 %v1138_v16  ;;  %951 = vset.pattern.permute.xlu0 %v1139_v17 }
  0x49   : > { %362 = vperm.xlu1 %942, %v1243_v3   ;;  %443 = vperm.xlu0 %951, %v1243_v3  }
  0x4a   : > { %943 = vset.pattern.permute.xlu2 %v1140_v18 }
  0x4b   : > { %371 = vperm.xlu2 %943, %v1243_v3  }
  0x51   : > { %944 = vset.pattern.permute.xlu1 %v1141_v19  ;;  %956 = vset.pattern.permute.xlu0 %v1143_v21  ;;  %v972_v19 = vld [vmem:[%s1248_s12 + $0xb] ss:$0 sm:$0xff] }
  0x52   : > { %380 = vperm.xlu1 %944, %v1243_v3   ;;  %488 = vperm.xlu0 %956, %v1243_v3  }
  0x53   : > { %945 = vset.pattern.permute.xlu2 %v1142_v20 }
  0x54   : > { %389 = vperm.xlu2 %945, %v1243_v3  }
  0x5a   : > { %947 = vset.pattern.permute.xlu1 %v1144_v22  ;;  %960 = vset.pattern.permute.xlu0 %v1146_v24 }
  0x5b   : > { %407 = vperm.xlu1 %947, %v1243_v3  }
  0x5c   : > { %948 = vset.pattern.permute.xlu2 %v1145_v23 }
  0x5d   : > { %416 = vperm.xlu2 %948, %v1243_v3  }
  0x63   : > { %949 = vset.pattern.permute.xlu1 %v1147_v25  ;;  %v973_v25 = vld [vmem:[%s1248_s12 + $0xc] ss:$0 sm:$0xff] }
  0x64   : > { %425 = vperm.xlu1 %949, %v1243_v3  }
  0x65   : > { %950 = vset.pattern.permute.xlu2 %v1148_v26 }
  0x66   : > { %434 = vperm.xlu2 %950, %v1243_v3  }
  0x6c   : > { %952 = vset.pattern.permute.xlu1 %v1149_v27 }
  0x6d   : > { %452 = vperm.xlu1 %952, %v1243_v3  }
  0x6e   : > { %953 = vset.pattern.permute.xlu2 %v1150_v28 }
  0x6f   : > { %461 = vperm.xlu2 %953, %v1243_v3  }
  0x75   : > { %954 = vset.pattern.permute.xlu1 %v1151_v29 }
  0x76   : > { %470 = vperm.xlu1 %954, %v1243_v3  }
  0x77   : > { %955 = vset.pattern.permute.xlu2 %v1152_v30  ;;  %v273_v33 = vpop.permute.xlu2 %272  ;;  %v974_v30 = vld [vmem:[%s1248_s12 + $0xd] ss:$0 sm:$0xff] }
  0x78   : > { %479 = vperm.xlu2 %955, %v1243_v3   ;;  %v276_v56 = vsub.f32 %v273_v33, %v963_v51 }
  0x7a   : > { %v277_v62 = vand.u32 2147483647, %v276_v56 }
  0x7e   : > { %957 = vset.pattern.permute.xlu1 %v1153_v31 }
  0x7f   : > { %497 = vperm.xlu1 %957, %v1243_v3  }
  0x80   : > { %958 = vset.pattern.permute.xlu2 %v1154_v32 }
  0x81   : > { %506 = vperm.xlu2 %958, %v1243_v3   ;;  %v282_v34 = vpop.permute.xlu2 %281 }
  0x82   : > { %v285_v60 = vsub.f32 %v282_v34, %v966_v54  ;;  %v975_v34 = vld [vmem:[%s1248_s12 + $0xe] ss:$0 sm:$0xff] }
  0x84   : > { %v286_v0 = vand.u32 2147483647, %v285_v60 }
  0x87   : > { %959 = vset.pattern.permute.xlu1 %v1146_v24 }
  0x88   : > { %515 = vperm.xlu1 %959, %v1243_v3  }
  0x8a   : > { %v300_v45 = vpop.permute.xlu2 %299 }
  0x8b   : > { %v303_v6 = vsub.f32 %v300_v45, %v968_v2 }
  0x8d   : > { %v304_v12 = vand.u32 2147483647, %v303_v6 }
  0x8e   : > { %v255_v35 = vpop.permute.xlu1 %254  ;;  %v237_v36 = vpop.permute.xlu0 %236 }
  0x8f   : > { %v240_v38 = vsub.f32 %v237_v36, %v962_v37  ;;  %v258_v46 = vsub.f32 %v255_v35, %v961_v40  ;;  %v976_v40 = vld [vmem:[%s1248_s12 + $0xf] ss:$0 sm:$0xff] }
  0x91   : > { %v241_v43 = vand.u32 2147483647, %v240_v38  ;;  %v259_v50 = vand.u32 2147483647, %v258_v46 }
  0x93   : > { %v327_v58 = vpop.permute.xlu2 %326 }
  0x94   : > { %v330_v21 = vsub.f32 %v327_v58, %v971_v15  ;;  %v980_v58 = vld [vmem:[%s1248_s12 + $0x13] ss:$0 sm:$0xff]  ;;  %v984_v15 = vld [vmem:[%s1248_s12 + $0x17] ss:$0 sm:$0xff] }
  0x96   : > { %v331_v27 = vand.u32 2147483647, %v330_v21 }
  0x97   : > { %v264_v41 = vpop.permute.xlu1 %263  ;;  %v246_v42 = vpop.permute.xlu0 %245 }
  0x98   : > { %v249_v44 = vsub.f32 %v246_v42, %v965_v39  ;;  %v267_v52 = vsub.f32 %v264_v41, %v964_v47 }
  0x9a   : > { %v250_v48 = vand.u32 2147483647, %v249_v44  ;;  %v268_v57 = vand.u32 2147483647, %v267_v52 }
  0x9c   : > { %v251_v49 = vadd.f32 %v250_v48, %v241_v43  ;;  %v345_v9 = vpop.permute.xlu2 %344  ;;  %v977_v43 = vld [vmem:[%s1248_s12 + $0x10] ss:$0 sm:$0xff] }
  0x9d   : > { %v348_v29 = vsub.f32 %v345_v9, %v973_v25 }
  0x9e   : > { %v260_v53 = vadd.f32 %v259_v50, %v251_v49  ;;  %v978_v49 = vld [vmem:[%s1248_s12 + $0x11] ss:$0 sm:$0xff] }
  0x9f   : > { %v349_v36 = vand.u32 2147483647, %v348_v29 }
  0xa0   : > { %v291_v55 = vpop.permute.xlu1 %290  ;;  %v269_v59 = vadd.f32 %v268_v57, %v260_v53  ;;  %v309_v8 = vpop.permute.xlu0 %308 }
  0xa1   : > { %v294_v1 = vsub.f32 %v291_v55, %v967_v61  ;;  %v312_v13 = vsub.f32 %v309_v8, %v969_v7  ;;  %v979_v55 = vld [vmem:[%s1248_s12 + $0x12] ss:$0 sm:$0xff] }
  0xa2   : > { %v278_v63 = vadd.f32 %v277_v62, %v269_v59 }
  0xa3   : > { %v295_v5 = vand.u32 2147483647, %v294_v1  ;;  %v313_v18 = vand.u32 2147483647, %v312_v13 }
  0xa4   : > { %v287_v4 = vadd.f32 %v286_v0, %v278_v63  ;;  %v981_v0 = vld [vmem:[%s1248_s12 + $0x14] ss:$0 sm:$0xff] }
  0xa5   : > { %v372_v22 = vpop.permute.xlu2 %371 }
  0xa6   : > { %v296_v11 = vadd.f32 %v295_v5, %v287_v4  ;;  %v375_v46 = vsub.f32 %v372_v22, %v976_v40 }
  0xa8   : > { %v305_v17 = vadd.f32 %v304_v12, %v296_v11  ;;  %v376_v51 = vand.u32 2147483647, %v375_v46 }
  0xa9   : > { %v318_v3 = vpop.permute.xlu1 %317  ;;  %v354_v32 = vpop.permute.xlu0 %353 }
  0xaa   : > { %v321_v14 = vsub.f32 %v318_v3, %v970_v10  ;;  %v314_v23 = vadd.f32 %v313_v18, %v305_v17  ;;  %v357_v37 = vsub.f32 %v354_v32, %v974_v30  ;;  %v982_v3 = vld [vmem:[%s1248_s12 + $0x15] ss:$0 sm:$0xff]  ;;  %v983_v10 = vld [vmem:[%s1248_s12 + $0x16] ss:$0 sm:$0xff]  ;;  %v985_v18 = vld [vmem:[%s1248_s12 + $0x18] ss:$0 sm:$0xff] }
  0xab   : > { %v1155_v30 = vmov -1e+30  }
  0xac   : > { %v322_v20 = vand.u32 2147483647, %v321_v14  ;;  %v358_v42 = vand.u32 2147483647, %v357_v37 }
  0xae   : > { %v323_v26 = vadd.f32 %v322_v20, %v314_v23  ;;  %v390_v38 = vpop.permute.xlu2 %389  ;;  %v528_v20 = vlaneseq }
  0xaf   : > { %v393_v54 = vsub.f32 %v390_v38, %v978_v49 }
  0xb0   : > { %v332_v33 = vadd.f32 %v331_v27, %v323_v26  ;;  %v1311_v25 = vand.u32 127, %v528_v20  ;;  %v986_v27 = vld [vmem:[%s1248_s12 + $0x19] ss:$0 sm:$0xff] }
  0xb1   : > { %v394_v61 = vand.u32 2147483647, %v393_v54 }
  0xb2   : > { %v336_v16 = vpop.permute.xlu1 %335  ;;  %v399_v56 = vpop.permute.xlu0 %398  ;;  %vm531_vm0 = vcmp.lt.s32.totalorder %v1311_v25, 8 }
  0xb3   : > { %v339_v24 = vsub.f32 %v336_v16, %v972_v19  ;;  %v402_v62 = vsub.f32 %v399_v56, %v979_v55 }
  0xb5   : > { %v340_v28 = vand.u32 2147483647, %v339_v24  ;;  %v403_v2 = vand.u32 2147483647, %v402_v62 }
  0xb7   : > { %v341_v35 = vadd.f32 %v340_v28, %v332_v33  ;;  %v417_v52 = vpop.permute.xlu2 %416 }
  0xb8   : > { %v420_v6 = vsub.f32 %v417_v52, %v981_v0  ;;  %v991_v52 = vld [vmem:[%s1248_s12 + $0x1e] ss:$0 sm:$0xff] }
  0xb9   : > { %v350_v41 = vadd.f32 %v349_v36, %v341_v35  ;;  %v988_v36 = vld [vmem:[%s1248_s12 + $0x1b] ss:$0 sm:$0xff] }
  0xba   : > { %v421_v12 = vand.u32 2147483647, %v420_v6  ;;  %v1337_v6 = vmov 0.0  }
  0xbb   : > { %v363_v31 = vpop.permute.xlu1 %362  ;;  %v359_v47 = vadd.f32 %v358_v42, %v350_v41  ;;  %v444_v16 = vpop.permute.xlu0 %443 }
  0xbc   : > { %v366_v39 = vsub.f32 %v363_v31, %v975_v34  ;;  %v447_v23 = vsub.f32 %v444_v16, %v984_v15  ;;  %v1317_v31 = vsel %vm531_vm0, 0.0, %v1155_v30  ;;  %v987_v34 = vld [vmem:[%s1248_s12 + $0x1a] ss:$0 sm:$0xff] }
  0xbe   : > { %v367_v45 = vand.u32 2147483647, %v366_v39  ;;  %v448_v29 = vand.u32 2147483647, %v447_v23 }
  0xc0   : > { %v368_v50 = vadd.f32 %v367_v45, %v359_v47  ;;  %v435_v4 = vpop.permute.xlu2 %434  ;;  %v990_v47 = vld [vmem:[%s1248_s12 + $0x1d] ss:$0 sm:$0xff] }
  0xc1   : > { %v438_v14 = vsub.f32 %v435_v4, %v983_v10 }
  0xc2   : > { %v377_v57 = vadd.f32 %v376_v51, %v368_v50 }
  0xc3   : > { %v439_v22 = vand.u32 2147483647, %v438_v14 }
  0xc4   : > { %v381_v44 = vpop.permute.xlu1 %380  ;;  %v489_v45 = vpop.permute.xlu0 %488 }
  0xc5   : > { %v384_v48 = vsub.f32 %v381_v44, %v977_v43  ;;  %v989_v44 = vld [vmem:[%s1248_s12 + $0x1c] ss:$0 sm:$0xff] }
  0xc6   : > { %v492_v50 = vsub.f32 %v489_v45, %v989_v44 }
  0xc7   : > { %v385_v53 = vand.u32 2147483647, %v384_v48 }
  0xc8   : > { %v493_v56 = vand.u32 2147483647, %v492_v50 }
  0xc9   : > { %v386_v60 = vadd.f32 %v385_v53, %v377_v57  ;;  %v462_v19 = vpop.permute.xlu2 %461 }
  0xca   : > { %v465_v33 = vsub.f32 %v462_v19, %v986_v27 }
  0xcb   : > { %v395_v1 = vadd.f32 %v394_v61, %v386_v60  ;;  %v992_v60 = vld [vmem:[%s1248_s12 + $0x1f] ss:$0 sm:$0xff] }
  0xcc   : > { %v466_v40 = vand.u32 2147483647, %v465_v33 }
  0xcd   : > { %v408_v59 = vpop.permute.xlu1 %407  ;;  %v404_v8 = vadd.f32 %v403_v2, %v395_v1 }
  0xce   : > { %v411_v63 = vsub.f32 %v408_v59, %v980_v58 }
  0xd0   : > { %v412_v5 = vand.u32 2147483647, %v411_v63 }
  0xd2   : > { %v413_v11 = vadd.f32 %v412_v5, %v404_v8  ;;  %v480_v38 = vpop.permute.xlu2 %479  ;;  %v1335_v5 = vmov 0.0  }
  0xd3   : > { %v483_v43 = vsub.f32 %v480_v38, %v988_v36 }
  0xd4   : > { %v422_v17 = vadd.f32 %v421_v12, %v413_v11 }
  0xd5   : > { %v484_v49 = vand.u32 2147483647, %v483_v43 }
  0xd6   : > { %v426_v7 = vpop.permute.xlu1 %425 }
  0xd7   : > { %v429_v9 = vsub.f32 %v426_v7, %v982_v3 }
  0xd9   : > { %v430_v13 = vand.u32 2147483647, %v429_v9 }
  0xdb   : > { %v431_v21 = vadd.f32 %v430_v13, %v422_v17  ;;  %v507_v54 = vpop.permute.xlu2 %506 }
  0xdc   : > { %v510_v58 = vsub.f32 %v507_v54, %v991_v52 }
  0xdd   : > { %v440_v28 = vadd.f32 %v439_v22, %v431_v21 }
  0xde   : > { %v511_v62 = vand.u32 2147483647, %v510_v58 }
  0xdf   : > { %v453_v24 = vpop.permute.xlu1 %452  ;;  %v449_v35 = vadd.f32 %v448_v29, %v440_v28 }
  0xe0   : > { %v456_v26 = vsub.f32 %v453_v24, %v985_v18 }
  0xe2   : > { %v457_v32 = vand.u32 2147483647, %v456_v26 }
  0xe4   : > { %v458_v39 = vadd.f32 %v457_v32, %v449_v35 }
  0xe6   : > { %v467_v46 = vadd.f32 %v466_v40, %v458_v39 }
  0xe8   : > { %v471_v37 = vpop.permute.xlu1 %470 }
  0xe9   : > { %v474_v41 = vsub.f32 %v471_v37, %v987_v34 }
  0xeb   : > { %v475_v42 = vand.u32 2147483647, %v474_v41 }
  0xed   : > { %v476_v48 = vadd.f32 %v475_v42, %v467_v46 }
  0xef   : > { %v485_v55 = vadd.f32 %v484_v49, %v476_v48 }
  0xf1   : > { %v498_v51 = vpop.permute.xlu1 %497  ;;  %v494_v59 = vadd.f32 %v493_v56, %v485_v55 }
  0xf2   : > { %v501_v53 = vsub.f32 %v498_v51, %v990_v47 }
  0xf4   : > { %v502_v57 = vand.u32 2147483647, %v501_v53 }
  0xf6   : > { %v503_v61 = vadd.f32 %v502_v57, %v494_v59 }
  0xf8   : > { %v512_v1 = vadd.f32 %v511_v62, %v503_v61 }
  0xfa   : > { %v516_v63 = vpop.permute.xlu1 %515 }
  0xfb   : > { %v519_v0 = vsub.f32 %v516_v63, %v992_v60 }
  0xfd   : > { %v520_v2 = vand.u32 2147483647, %v519_v0 }
  0xff   : > { %v521_v3 = vadd.f32 %v520_v2, %v512_v1 }
 0x101   : > { %v522_v4 = vmul.f32 -10.0, %v521_v3  ;;  %525 = vst.msk [vmem:[%s1327_s20] sm:$0xff] %vm524_vm1, %v521_v3 }
 0x103   : > { %523 = vst [vmem:[#allocation2] sm:$0xff] %v522_v4 }
 0x104 LB: >> { %v549_v9 = vadd.f32 %v1113_v5, %v1317_v31  ;;  %vm589_vm2 = vcmask 7168   ;;  %s601_s23 = sadd.s32 1, %s1121_s23   ;;  %s1121_s23 = sphi %s1339_s23, %s601_s23   ;;  %v1117_v6 = vphi %v1337_v6, %v1421_v6   ;;  %v1113_v5 = vphi %v1335_v5, %v1420_v5  }
 0x105   : >> { %p541_p11 = scmp.lt.s32.totalorder %s601_s23, 50 }
 0x10a   : >> { %v547_v7 = vld [vmem:[#allocation2] sm:$0xff] }
 0x10b   : >> { %v548_v8 = vadd.f32 %v1117_v6, %v547_v7 }
 0x10d   : >> { %v550_v10 = vadd.f32 %v549_v9, %v548_v8 }
 0x10f   : >> { %551 = vmax.xlane.f32.xlu0 %v550_v10 }
 0x182   : >> { %v552_v11 = vpop.xlane.xlu0 %551 }
 0x183   : >> { %v553_v12 = vsub.f32 %v550_v10, %v552_v11 }
 0x185   : >> { %v554_v13 = vmul.f32 1.442695, %v553_v12 }
 0x187   : >> { %993 = vpow2.f32 %v554_v13 }
 0x18d   : >> { %v994_v14 = vpop.eup %993 }
 0x18e   : >> { %556 = vadd.xlane.f32.xlu0 %v994_v14 }
 0x201   : >> { %v557_v15 = vpop.xlane.xlu0 %556 }
 0x202   : >> { %995 = vlog2.f32 %v557_v15 }
 0x208   : >> { %v996_v16 = vpop.eup %995 }
 0x209   : >> { %v559_v17 = vmul.f32 0.6931472, %v996_v16 }
 0x20b   : >> { %v560_v18 = vadd.f32 %v559_v17, %v552_v11 }
 0x20d   : >> { %v561_v19 = vsub.f32 -2.0794415, %v560_v18 }
 0x20f   : >> { %v562_v20 = vadd.f32 %v1117_v6, %v561_v19  }
 0x211   : >> { %v586_v21 = vsub.f32 %v562_v20, %v1117_v6  ;;  %v564_v22 = vadd.f32 %v562_v20, %v547_v7  ;;  %v1421_v6 = vmov %v562_v20 }
 0x213   : >> { %v587_v23 = vand.u32 2147483647, %v586_v21  ;;  %v565_v24 = vadd.f32 %v1113_v5, %v564_v22 }
 0x215   : >> { %v590_v26 = vsel %vm589_vm2, %v587_v23, 0.0  ;;  %v566_v27 = vrot.slane %v565_v24, 4 }
 0x216   : >> { %591 = vadd.xlane.f32.xlu1 %v590_v26 }
 0x217   : >> { %v567_v28 = vmax.f32 %v565_v24, %v566_v27 }
 0x219   : >> { %v568_v29 = vrot.slane %v567_v28, 2 }
 0x21b   : >> { %v569_v30 = vmax.f32 %v567_v28, %v568_v29 }
 0x21d   : >> { %v570_v32 = vrot.slane %v569_v30, 1 }
 0x21f   : >> { %v571_v33 = vmax.f32 %v569_v30, %v570_v32 }
 0x221   : >> { %v572_v34 = vsub.f32 %v565_v24, %v571_v33 }
 0x223   : >> { %v573_v35 = vmul.f32 1.442695, %v572_v34 }
 0x225   : >> { %997 = vpow2.f32 %v573_v35 }
 0x22b   : >> { %v998_v36 = vpop.eup %997 }
 0x22c   : >> { %v575_v37 = vrot.slane %v998_v36, 4 }
 0x22e   : >> { %v576_v38 = vadd.f32 %v998_v36, %v575_v37 }
 0x230   : >> { %v577_v39 = vrot.slane %v576_v38, 2 }
 0x232   : >> { %v578_v40 = vadd.f32 %v577_v39, %v576_v38 }
 0x234   : >> { %v579_v41 = vrot.slane %v578_v40, 1 }
 0x236   : >> { %v580_v42 = vadd.f32 %v579_v41, %v578_v40 }
 0x238   : >> { %999 = vlog2.f32 %v580_v42 }
 0x23e   : >> { %v1000_v43 = vpop.eup %999 }
 0x23f   : >> { %v582_v44 = vmul.f32 0.6931472, %v1000_v43 }
 0x241   : >> { %v583_v45 = vadd.f32 %v582_v44, %v571_v33 }
 0x243   : >> { %v584_v46 = vsub.f32 -2.0794415, %v583_v45 }
 0x245   : >> { %v585_v47 = vadd.f32 %v1113_v5, %v584_v46  }
 0x247   : >> { %v1420_v5 = vmov %v585_v47 }
 0x289   : >> { %v592_v48 = vpop.xlane.xlu1 %591 }
 0x28a   : >> { %v593_v49 = vrot.slane %v592_v48, 4 }
 0x28c   : >> { %v594_v50 = vadd.f32 %v593_v49, %v592_v48 }
 0x28e   : >> { %v595_v51 = vrot.slane %v594_v50, 2 }
 0x290   : >> { %v596_v52 = vadd.f32 %v595_v51, %v594_v50 }
 0x292   : >> { %v597_v53 = vrot.slane %v596_v52, 1 }
 0x294   : >> { %v598_v54 = vadd.f32 %v597_v53, %v596_v52 }
 0x296   : >> { %822 = vpush %v598_v54 }
 0x2c7   : >> { %s823_s28 = spop %822 }
 0x2c8   : >> { %s600_s29 = smul.f32 0.1, %s823_s28 }
 0x2ca   : >> { %p542_p12 = scmp.ge.f32.partialorder %s600_s29, 0.1 }
 0x2cc   : >> { %p543_p13 = pnand %p542_p12, %p541_p11 }
 0x2cd   : > { %v602_v55 = vld [vmem:[#allocation2] sm:$0xff] (%p543_p13)  ;;  %v1156_v59 = vmov (%p543_p13), 0.0   ;;  %s817_s30 = sshll.u32 (%p543_p13), %s1203_s19, 3  ;;  %s652_s12 = sshll.u32 (%p543_p13), %s1333_s22, 4  ;;  %s653_s12 = int_to_ptr.vmem [resolvable:$true] %s652_s12 }
 0x2ce   : > { %546 = sbr.rel (!%p543_p13) target bundleno = 260 (0x104), region = 102  ;;  %v603_v56 = vadd.f32 (%p543_p13), %v602_v55, %v562_v20  ;;  %v609_v60 = vsel (%p543_p13), %vm531_vm0, 1.0, %v1156_v59  ;;  %s650_s8 = scalar_lea.hbm (%p543_p13), %s1414_s3, %s817_s30 }
 0x2cf   : > { %s664_s11 = scalar_lea.hbm (%p543_p13), %s1415_s4, %s817_s30  ;;  %s654_s14 = sshll.u32 (%p543_p13), %s650_s8, 4  ;;  %s655_s14 = int_to_ptr.hbm [resolvable:$true] %s654_s14 }
 0x2d0   : > { %v604_v57 = vadd.f32 (%p543_p13), %v603_v56, %v585_v47  ;;  %s632_s23 = scalar_lea.sflag (%p543_p13), [#allocation4], %s1280_s13  ;;  %s1017_s28 = sshra.s32 (%p543_p13), %s655_s14, 4  ;;  %s1018_s28 = int_to_ptr.hbm [resolvable:$true] %s1017_s28 }
 0x2d1   : > { %s1019_s29 = scalar_lea.hbm (%p543_p13), %s1018_s28, 8  ;;  %s1023_s6 = scalar_lea.hbm (%p543_p13), %s1414_s3, 16 }
 0x2d2   : > { %v610_v58 = vmul.f32 (%p543_p13), 1.442695, %v604_v57  ;;  %p1020_p0 = scmp.ne.s32.totalorder (%p543_p13), %s1018_s28, %s1019_s29  ;;  %p1024_p3 = scmp.lt.s32.totalorder (%p543_p13), %s1018_s28, %s1414_s3 }
 0x2d3   : > { %p1025_p4 = scmp.lt.s32.totalorder %s1023_s6, %s1019_s29 }
 0x2d4   : > { %1001 = vpow2.f32 %v610_v58  ;;  %p1021_p1 = pnand %p1020_p0, %p1220_p5 }
 0x2d5   : > { %p1026_p7 = por %p1025_p4, %p1024_p3 }
 0x2d6   : > { %p1022_p2 = pneg %p1021_p1 }
 0x2d8   : > { %p1027_p8 = pnand %p1026_p7, %p1022_p2 }
 0x2da   : > { %v1002_v61 = vpop.eup %1001 }
 0x2db   : > { %v612_v62 = vmul.f32 %v1002_v61, %v609_v60 }
 0x2dd   : > { %v614_v63 = vmul.f32 %v612_v62, %v602_v55  ;;  %613 = vst.msk [vmem:[%s1333_s22] sm:$0xff] %vm524_vm1, %v612_v62 }
 0x2df   : > { %615 = vadd.xlane.f32.xlu0 %v614_v63 }
 0x2e0   : > { %1030 = shalt.err (!%p1027_p8)
}
 0x2e1   : > { %826 = dma.vmem_to_hbm [thread:$0]  (%p1220_p5), %s653_s12, 128, %s655_s14, %s632_s23  }
 0x2e2   : > { %s666_s22 = sshll.u32 %s1327_s20, 4  ;;  %s668_s30 = sshll.u32 %s664_s11, 4  ;;  %s667_s22 = int_to_ptr.vmem [resolvable:$true] %s666_s22  ;;  %s669_s30 = int_to_ptr.hbm [resolvable:$true] %s668_s30 }
 0x2e3   : > { %s637_s5 = scalar_lea.sflag [#allocation6], %s1280_s13  ;;  %s1045_s8 = sshra.s32 %s669_s30, 4  ;;  %s1046_s8 = int_to_ptr.hbm [resolvable:$true] %s1045_s8 }
 0x2e4   : > { %s1047_s9 = scalar_lea.hbm %s1046_s8, 8  ;;  %s1051_s28 = scalar_lea.hbm %s1415_s4, 16 }
 0x2e5   : > { %p1048_p9 = scmp.ne.s32.totalorder %s1046_s8, %s1047_s9  ;;  %p1052_p12 = scmp.lt.s32.totalorder %s1046_s8, %s1415_s4 }
 0x2e6   : > { %p1053_p13 = scmp.lt.s32.totalorder %s1051_s28, %s1047_s9 }
 0x2e7   : > { %p1049_p10 = pnand %p1048_p9, %p1220_p5 }
 0x2e8   : > { %p1054_p0 = por %p1053_p13, %p1052_p12 }
 0x2e9   : > { %p1050_p11 = pneg %p1049_p10 }
 0x2eb   : > { %p1055_p1 = pnand %p1054_p0, %p1050_p11 }
 0x2ed   : > { %1058 = shalt.err (!%p1055_p1)
}
 0x2ee   : > { %827 = dma.vmem_to_hbm [thread:$0]  (%p1220_p5), %s667_s22, 128, %s669_s30, %s637_s5   ;;  %vm626_vm3 = vcmask 0  }
 0x2ef   : > { %s1422_s12 = scalar_lea.vmem %s1413_s2, %s1232_s27 }
 0x352   : > { %v616_v25 = vpop.xlane.xlu0 %615 }
 0x353   : > { %v617_v31 = vrot.slane %v616_v25, 4 }
 0x355   : > { %v618_v0 = vadd.f32 %v617_v31, %v616_v25 }
 0x357   : > { %v619_v1 = vrot.slane %v618_v0, 2 }
 0x359   : > { %v620_v2 = vadd.f32 %v619_v1, %v618_v0 }
 0x35b   : > { %v621_v3 = vrot.slane %v620_v2, 1 }
 0x35d   : > { %v622_v4 = vadd.f32 %v621_v3, %v620_v2 }
 0x35f   : > { %824 = vpush %v622_v4 }
 0x390   : > { %s825_s13 = spop %824 }
 0x391   : > { %v624_v5 = vstv %s825_s13 }
 0x392   : > { %v625_v6 = vmul.f32 -0.1, %v624_v5 }
 0x394   : > { %627 = vst.msk [vmem:[%s1422_s12] sm:$0x1] %vm626_vm3, %v625_v6 }
 0x395 PF: > { %p837_p5 = scmp.ge.s32.totalorder %s1109_s18, 2  ;;  %s686_s25 = sand.u32 1, %s1097_s15  }
 0x396   : > { %s687_s14 = scalar_lea.sflag [#allocation4], %s686_s25 }
 0x397   : > { %p831_p2 = pnand %p837_p5, %p1224_p6 }
 0x399   : > { %p832_p3 = pneg %p831_p2 }
 0x39b   : > { %1088 = dma.done.wait (%p832_p3), %s687_s14, 128  }
 0x39c   : > { %1090 = vsyncadd (%p832_p3), %s687_s14, 4294967168  ;;  %s697_s23 = scalar_lea.sflag [#allocation6], %s686_s25 }
 0x39d   : > { %1092 = dma.done.wait (%p832_p3), %s697_s23, 128  }
 0x39e   : > { %1094 = vsyncadd (%p832_p3), %s697_s23, 4294967168  ;;  %p18_p4 = scmp.ge.s32.totalorder %s1207_s21, 4   ;;  %s1423_s15 = smov %s1101_s16 }
 0x39f   : > { %s1424_s16 = smov %s1105_s17  ;;  %s1425_s17 = smov %s1218_s24 }
 0x3a0   : > { %s1426_s18 = smov %s1207_s21  ;;  %20 = sbr.rel (!%p18_p4) target bundleno = 7 (0x7), region = 113 }
 0x3a5   :  { %703 = vsyncpa [#allocation4], 1 }
 0x3a6   :  { %705 = vsyncpa [#allocation4 + $0x1], 1 }
 0x3a7   :  { %706 = vsyncpa [#allocation6], 1 }
 0x3a8   :  { %708 = vsyncpa [#allocation6 + $0x1], 1 }

</bundles_post_ra>
